<compile_context>
chip_gen: v7x
topology: tpu7x:2x2x1
jax: 0.10.0
libtpu: 0.0.40
codegen_flags: <defaults>
</compile_context>

<pallas_src>
import functools

import jax
import jax.numpy as jnp
from jax.experimental import pallas as pl
from jax.experimental.pallas import tpu as pltpu


# ----------------------------------------------------------------------------
# Tiling helpers
# ----------------------------------------------------------------------------
def _pick_vocab_tile(V):
    # Big vocabs stream through VMEM in 2048-lane tiles; V is padded UP to a
    # multiple of the tile (review fix: do not pick a divisor of V_pad).
    if V >= 2048:
        return 2048
    return max(128, ((V + 127) // 128) * 128)


def _pick_row_tile(rows):
    # TODO(synk): sweep 256-512 per chip; 256 keeps the [tm, tv] f32
    # temporaries inside the v7x 64 MiB VMEM budget at tv=2048.
    if rows >= 256:
        return 256
    if rows >= 128:
        return 128
    return max(8, ((rows + 7) // 8) * 8)


def _splitmix32(x):
    """Stateless uint32 mixer (Pallas / interpret-mode friendly PRNG)."""
    x = x ^ (x >> 16)
    x = x * jnp.uint32(0x7FEB352D)
    x = x ^ (x >> 15)
    x = x * jnp.uint32(0x846CA68B)
    x = x ^ (x >> 16)
    return x


# ----------------------------------------------------------------------------
# Kernel 1: actor hidden -> lm_head -> online softmax -> streaming sample
# ----------------------------------------------------------------------------
def _make_actor_lm_kernel(emit_logits, tm, tv, v_total):
    def kernel(seed_ref,                  # [1] int32 (scalar prefetch, SMEM)
               emb_ref,                   # [tm, E]  bf16
               w1_ref, b1_ref,            # [E, H] bf16 / [1, H] f32
               wlm_ref, blm_ref,          # [H, tv] bf16 / [1, tv] f32
               *refs):
        if emit_logits:
            (logits_ref, idx_ref, sprob_ref,
             h_s, m_s, l_s, br_s, bidx_s, blogit_s) = refs
        else:
            (idx_ref, sprob_ref,
             h_s, m_s, l_s, br_s, bidx_s, blogit_s) = refs

        i = pl.program_id(0)
        v = pl.program_id(1)
        nv = pl.num_programs(1)

        @pl.when(v == 0)
        def _init():
            pre = (jnp.dot(emb_ref[...], w1_ref[...],
                           preferred_element_type=jnp.float32) + b1_ref[...])
            h_s[...] = jnp.tanh(pre).astype(h_s.dtype)
            m_s[...] = jnp.full_like(m_s, -jnp.inf)
            l_s[...] = jnp.zeros_like(l_s)
            br_s[...] = jnp.zeros_like(br_s)          # race stat >= 0
            bidx_s[...] = jnp.zeros_like(bidx_s)
            blogit_s[...] = jnp.full_like(blogit_s, -jnp.inf)

        # lm_head on this vocab tile (bf16 MXU operands, f32 accumulation).
        logits = (jnp.dot(h_s[...], wlm_ref[...],
                          preferred_element_type=jnp.float32) + blm_ref[...])
        if emit_logits:
            # bf16 writeback halves the dominant HBM output stream; padded
            # lanes carry ~-1e30 (finite in bf16) and are sliced off outside.
            logits_ref[...] = logits.astype(logits_ref.dtype)

        # ---- online softmax: running max + denominator (f32) ----
        m_prev = m_s[...]
        m_new = jnp.maximum(m_prev, jnp.max(logits, axis=-1, keepdims=True))
        scale = jnp.exp(m_prev - m_new)                # 0.0 on the first tile
        e = jnp.exp(logits - m_new)                    # reused for sampling
        l_s[...] = scale * l_s[...] + jnp.sum(e, axis=-1, keepdims=True)
        m_s[...] = m_new

        # ---- streaming categorical sample via the exponential race ----
        #   winner = argmax_j exp(l_j - m) / E_j,  E_j = -log(U_j) ~ Exp(1)
        # (equivalent to Gumbel-max; reuses `e`, one log per element).
        row_u = (jax.lax.broadcasted_iota(jnp.int32, logits.shape, 0)
                 + i * tm).astype(jnp.uint32)
        col_u = (jax.lax.broadcasted_iota(jnp.int32, logits.shape, 1)
                 + v * tv).astype(jnp.uint32)
        x = row_u * jnp.uint32(v_total) + col_u + seed_ref[0].astype(jnp.uint32)
        x = _splitmix32(x)
        mant = (x >> 8).astype(jnp.int32).astype(jnp.float32)     # [0, 2^24)
        u = (mant + 0.5) * jnp.float32(1.0 / 16777216.0)          # (0, 1)
        race = e / (-jnp.log(u))

        r_tile = jnp.max(race, axis=-1, keepdims=True)
        is_max = race >= r_tile
        lane = jax.lax.broadcasted_iota(jnp.int32, race.shape, 1) + v * tv
        idx_tile = jnp.max(jnp.where(is_max, lane, -1), axis=-1, keepdims=True)
        # NOTE: if two lanes tie exactly in `race`, the logit picked below can
        # belong to the other tied lane (measure-zero with continuous f32).
        logit_tile = jnp.max(jnp.where(is_max, logits, -jnp.inf),
                             axis=-1, keepdims=True)

        br_prev = br_s[...] * scale          # re-reference old best to m_new
        better = r_tile > br_prev
        br_s[...] = jnp.where(better, r_tile, br_prev)
        bidx_s[...] = jnp.where(better, idx_tile, bidx_s[...])
        blogit_s[...] = jnp.where(better, logit_tile, blogit_s[...])

        @pl.when(v == nv - 1)
        def _finalize():
            # Exact division: once per row tile on [tm, 1]; sample_probs feed
            # PPO ratios, so accuracy is free here.
            sprob_ref[...] = jnp.exp(blogit_s[...] - m_s[...]) / l_s[...]
            idx_ref[...] = bidx_s[...]

    return kernel


def run_actor_lm(seed, emb_rows, w1, b1, wlm, blm, *, tm, tv, emit_logits,
                 vmem_limit_bytes=48 * 1024 * 1024):
    # vmem_limit_bytes: raise toward ~96 MiB on v5e/v6e (bigger tv / deeper
    # buffering); keep <= ~56 MiB on v7x (64 MiB physical per TC).
    BS, E = emb_rows.shape
    H, V_pad = wlm.shape
    assert BS % tm == 0 and V_pad % tv == 0
    grid = (BS // tm, V_pad // tv)

    out_shape = []
    out_specs = []
    if emit_logits:
        out_shape.append(jax.ShapeDtypeStruct((BS, V_pad), jnp.bfloat16))
        out_specs.append(pl.BlockSpec((tm, tv), lambda i, v, s: (i, v)))
    out_shape += [jax.ShapeDtypeStruct((BS, 1), jnp.int32),     # sample_idx
                  jax.ShapeDtypeStruct((BS, 1), jnp.float32)]   # sample_probs
    out_specs += [pl.BlockSpec((tm, 1), lambda i, v, s: (i, 0)),
                  pl.BlockSpec((tm, 1), lambda i, v, s: (i, 0))]

    kernel = _make_actor_lm_kernel(emit_logits, tm, tv, V_pad)
    return pl.pallas_call(
        kernel,
        out_shape=tuple(out_shape),
        grid_spec=pltpu.PrefetchScalarGridSpec(
            num_scalar_prefetch=1,
            grid=grid,
            in_specs=[
                pl.BlockSpec((tm, E), lambda i, v, s: (i, 0)),
                pl.BlockSpec((E, H), lambda i, v, s: (0, 0)),
                pl.BlockSpec((1, H), lambda i, v, s: (0, 0)),
                pl.BlockSpec((H, tv), lambda i, v, s: (0, v)),
                pl.BlockSpec((1, tv), lambda i, v, s: (0, v)),
            ],
            out_specs=tuple(out_specs),
            scratch_shapes=[
                pltpu.VMEM((tm, H), jnp.bfloat16),   # h = tanh(emb @ w1 + b1)
                pltpu.VMEM((tm, 1), jnp.float32),    # running max
                pltpu.VMEM((tm, 1), jnp.float32),    # running denom
                pltpu.VMEM((tm, 1), jnp.float32),    # best race statistic
                pltpu.VMEM((tm, 1), jnp.int32),      # sampled index
                pltpu.VMEM((tm, 1), jnp.float32),    # sampled logit
            ],
        ),
        compiler_params=pltpu.CompilerParams(
            dimension_semantics=("parallel", "arbitrary"),
            vmem_limit_bytes=vmem_limit_bytes),
    )(seed, emb_rows, w1, b1, wlm, blm)


# ----------------------------------------------------------------------------
# Kernel 2: critic — masked mean-pool (MXU) + 2-layer MLP -> value
# ----------------------------------------------------------------------------
def critic_kernel(emb_ref, mask_ref, wc1_ref, bc1_ref, wc2_ref, bc2_ref,
                  val_ref):
    mask = mask_ref[...]                                    # [tb, S] bf16
    emb = emb_ref[...]                                      # [tb, S, E] bf16
    # Masked pooled sum as a batched MXU contraction — avoids materializing
    # the [tb, S, E] f32 intermediate of mask-multiply + sublane-axis sum.
    pooled = jnp.einsum("bqs,bse->bqe", mask[:, None, :], emb,
                        preferred_element_type=jnp.float32)[:, 0, :]  # [tb, E]
    msum = jnp.maximum(
        jnp.sum(mask.astype(jnp.float32), axis=-1, keepdims=True), 1.0)
    pooled = pooled / msum
    h = jnp.tanh(jnp.dot(pooled.astype(jnp.bfloat16), wc1_ref[...],
                         preferred_element_type=jnp.float32) + bc1_ref[...])
    val_ref[...] = (jnp.dot(h.astype(jnp.bfloat16), wc2_ref[...],
                            preferred_element_type=jnp.float32) + bc2_ref[...])


def run_critic(samp_emb, mask, wc1, bc1, wc2, bc2):
    B, S, E = samp_emb.shape
    Hc = wc1.shape[1]
    N = wc2.shape[1]                                        # lane-padded (128)
    if B <= 8:
        tb, B_pad = B, B
    else:
        tb = 8
        B_pad = ((B + 7) // 8) * 8
        if B_pad != B:
            samp_emb = jnp.pad(samp_emb, ((0, B_pad - B), (0, 0), (0, 0)))
            mask = jnp.pad(mask, ((0, B_pad - B), (0, 0)))
    vals = pl.pallas_call(
        critic_kernel,
        out_shape=jax.ShapeDtypeStruct((B_pad, N), jnp.float32),
        grid_spec=pltpu.PrefetchScalarGridSpec(
            num_scalar_prefetch=0,
            grid=(B_pad // tb,),
            in_specs=[
                pl.BlockSpec((tb, S, E), lambda i: (i, 0, 0)),
                pl.BlockSpec((tb, S), lambda i: (i, 0)),
                pl.BlockSpec((E, Hc), lambda i: (0, 0)),
                pl.BlockSpec((1, Hc), lambda i: (0, 0)),
                pl.BlockSpec((Hc, N), lambda i: (0, 0)),
                pl.BlockSpec((1, N), lambda i: (0, 0)),
            ],
            out_specs=pl.BlockSpec((tb, N), lambda i: (i, 0)),
        ),
        compiler_params=pltpu.CompilerParams(
            dimension_semantics=("parallel",)),
    )(samp_emb, mask, wc1, bc1, wc2, bc2)
    return vals[:B]


# ----------------------------------------------------------------------------
# Parameter prep (ONCE, outside jit) + ActorCritic forward (glue in JAX)
# ----------------------------------------------------------------------------
def prepare_params(params):
    """One-time bf16 casts + lane padding — doing this per forward was a full
    extra HBM pass over the lm_head weight."""
    H, V = params["wlm"].shape
    tv = _pick_vocab_tile(V)
    V_pad = ((V + tv - 1) // tv) * tv
    wlm, blm = params["wlm"], params["blm"]
    if V_pad != V:
        wlm = jnp.pad(wlm, ((0, 0), (0, V_pad - V)))
        # -1e30 keeps padded lanes out of the softmax / sample (finite in bf16).
        blm = jnp.pad(blm, ((0, 0), (0, V_pad - V)), constant_values=-1e30)
    p = dict(params)
    p["actor_emb_bf16"] = params["actor_emb"].astype(jnp.bfloat16)
    p["critic_emb_bf16"] = params["critic_emb"].astype(jnp.bfloat16)
    p["w1_bf16"] = params["w1"].astype(jnp.bfloat16)
    p["wlm_bf16"] = wlm.astype(jnp.bfloat16)
    p["blm_pad"] = blm
    p["wc1_bf16"] = params["wc1"].astype(jnp.bfloat16)
    p["wc2_pad_bf16"] = jnp.pad(params["wc2"],
                                ((0, 0), (0, 127))).astype(jnp.bfloat16)
    p["bc2_pad"] = jnp.pad(params["bc2"], ((0, 0), (0, 127)))
    return p


def actor_critic_forward(params, sequences, sequences_mask, action_len, key):
    """Returns (real_actions_logits, real_values, sample_probs, sample_idx)."""
    B, S = sequences.shape
    emb_tbl = params["actor_emb_bf16"]
    V, E = emb_tbl.shape
    wlm, blm = params["wlm_bf16"], params["blm_pad"]
    V_pad = wlm.shape[1]
    tv = _pick_vocab_tile(V_pad)
    assert V_pad % tv == 0

    # Actor token embedding (gather stays in XLA) + pad masking, bf16 rows.
    x_emb = emb_tbl[sequences] * sequences_mask[..., None].astype(jnp.bfloat16)

    seeds = jax.random.randint(key, (2,), 0, jnp.iinfo(jnp.int32).max,
                               dtype=jnp.int32)

    def _run(rows_emb, seed, emit_logits):
        rows = rows_emb.shape[0]
        tm = _pick_row_tile(rows)
        rows_pad = ((rows + tm - 1) // tm) * tm
        if rows_pad != rows:
            rows_emb = jnp.pad(rows_emb, ((0, rows_pad - rows), (0, 0)))
        outs = run_actor_lm(seed, rows_emb, params["w1_bf16"], params["b1"],
                            wlm, blm, tm=tm, tv=tv, emit_logits=emit_logits)
        return outs, rows

    # Action rows (the only rows whose logits are consumed) -> logits + sample.
    n_state = S - action_len
    act_emb = x_emb[:, n_state:, :].reshape(B * action_len, E)
    (logits_a, idx_a, sp_a), rows_a = _run(act_emb, seeds[0:1], True)

    act_idx = idx_a[:rows_a, 0].reshape(B, action_len)
    act_sp = sp_a[:rows_a, 0].reshape(B, action_len)
    real_actions_logits = (logits_a[:rows_a, :V]
                           .astype(jnp.float32)
                           .reshape(B, action_len, V))

    # State rows: sample only (no [rows, V] logits writeback at all).
    if n_state > 0:
        st_emb = x_emb[:, :n_state, :].reshape(B * n_state, E)
        (idx_s, sp_s), rows_s = _run(st_emb, seeds[1:2], False)
        st_idx = idx_s[:rows_s, 0].reshape(B, n_state)
        st_sp = sp_s[:rows_s, 0].reshape(B, n_state)
        sample_idx = jnp.concatenate([st_idx, act_idx], axis=1)
        sample_probs = jnp.concatenate([st_sp, act_sp], axis=1)
    else:
        sample_idx, sample_probs = act_idx, act_sp

    # TODO(synk): tokenizer.batch_decode + the text-based critic have no
    # Pallas equivalent; the critic consumes the sampled token ids directly.
    samp_emb = params["critic_emb_bf16"][sample_idx]            # [B, S, E]
    values = run_critic(samp_emb, sequences_mask.astype(jnp.bfloat16),
                        params["wc1_bf16"], params["bc1"],
                        params["wc2_pad_bf16"], params["bc2_pad"])
    real_values = values[:, :1]                                 # [B, 1]
    return real_actions_logits, real_values, sample_probs, sample_idx


def init_params(key, vocab, emb_dim, hidden, critic_hidden):
    ks = jax.random.split(key, 8)
    s = 0.02
    return {
        "actor_emb": s * jax.random.normal(ks[0], (vocab, emb_dim), jnp.float32),
        "w1":        s * jax.random.normal(ks[1], (emb_dim, hidden), jnp.float32),
        "b1":        jnp.zeros((1, hidden), jnp.float32),
        "wlm":       s * jax.random.normal(ks[2], (hidden, vocab), jnp.float32),
        "blm":       jnp.zeros((1, vocab), jnp.float32),
        "critic_emb": s * jax.random.normal(ks[3], (vocab, emb_dim), jnp.float32),
        "wc1":       s * jax.random.normal(ks[4], (emb_dim, critic_hidden), jnp.float32),
        "bc1":       jnp.zeros((1, critic_hidden), jnp.float32),
        "wc2":       s * jax.random.normal(ks[5], (critic_hidden, 1), jnp.float32),
        "bc2":       jnp.zeros((1, 1), jnp.float32),
    }


if __name__ == "__main__":
    B, S = 2, 8            # batch, sequence length ([states, actions])
    V = 128                # vocab size
    E, H, HC = 32, 32, 32  # embed dim, actor hidden, critic hidden
    ACTION_LEN = 4

    root = jax.random.PRNGKey(0)
    k_param, k_seq, k_sample = jax.random.split(root, 3)

    params = prepare_params(init_params(k_param, V, E, H, HC))
    sequences = jax.random.randint(k_seq, (B, S), 0, V, dtype=jnp.int32)
    sequences_mask = jnp.ones((B, S), dtype=jnp.int32)

    fwd = jax.jit(functools.partial(actor_critic_forward, action_len=ACTION_LEN))
    real_logits, real_values, sample_probs, sample_idx = fwd(
        params, sequences, sequences_mask, key=k_sample)
    jax.block_until_ready((real_logits, real_values, sample_probs, sample_idx))

    assert real_logits.shape == (B, ACTION_LEN, V)
    assert real_values.shape == (B, 1)
    assert sample_probs.shape == (B, S)
    assert sample_idx.shape == (B, S)
    assert bool(jnp.all(jnp.isfinite(real_logits)))
    assert bool(jnp.all(jnp.isfinite(real_values)))
    assert bool(jnp.all((sample_idx >= 0) & (sample_idx < V)))
    assert bool(jnp.all((sample_probs > 0.0) & (sample_probs <= 1.0 + 1e-3)))
    print("KERNEL_OK")
</pallas_src>

<mosaic_0001>
module attributes {stable_mosaic.version = 11 : i64} {
  func.func @kernel(%arg0: i32, %arg1: i32, %arg2: memref<1xi32, #tpu.memory_space<smem>>, %arg3: memref<8x32xbf16, #tpu.memory_space<vmem>>, %arg4: memref<32x32xbf16, #tpu.memory_space<vmem>>, %arg5: memref<1x32xf32, #tpu.memory_space<vmem>>, %arg6: memref<32x128xbf16, #tpu.memory_space<vmem>>, %arg7: memref<1x128xf32, #tpu.memory_space<vmem>>, %arg8: memref<8x128xbf16, #tpu.memory_space<vmem>>, %arg9: memref<8x1xi32, #tpu.memory_space<vmem>>, %arg10: memref<8x1xf32, #tpu.memory_space<vmem>>, %arg11: memref<8x32xbf16, #tpu.memory_space<vmem>>, %arg12: memref<8x1xf32, #tpu.memory_space<vmem>>, %arg13: memref<8x1xf32, #tpu.memory_space<vmem>>, %arg14: memref<8x1xf32, #tpu.memory_space<vmem>>, %arg15: memref<8x1xi32, #tpu.memory_space<vmem>>, %arg16: memref<8x1xf32, #tpu.memory_space<vmem>>) attributes {dimension_semantics = [#tpu.dimension_semantics<parallel>, #tpu.dimension_semantics<arbitrary>], iteration_bounds = array<i64: 1, 1>, scalar_prefetch = 1 : i64, scratch_operands = 6 : i64, tpu.core_type = #tpu.core_type<tc>, window_params = [{transform_indices = @transform_0, window_bounds = array<i64: 8, 32>}, {pipeline_mode = #tpu.pipeline_mode<synchronous>, transform_indices = @transform_1, window_bounds = array<i64: 32, 32>}, {pipeline_mode = #tpu.pipeline_mode<synchronous>, transform_indices = @transform_2, window_bounds = array<i64: 1, 32>}, {transform_indices = @transform_3, window_bounds = array<i64: 32, 128>}, {transform_indices = @transform_4, window_bounds = array<i64: 1, 128>}, {transform_indices = @transform_5, window_bounds = array<i64: 8, 128>}, {transform_indices = @transform_6, window_bounds = array<i64: 8, 1>}, {transform_indices = @transform_7, window_bounds = array<i64: 8, 1>}]} {
    %c0_i32 = arith.constant 0 : i32
    %0 = arith.cmpi eq, %arg1, %c0_i32 : i32
    %1 = arith.extui %0 : i1 to i32
    %c0_i32_0 = arith.constant 0 : i32
    %2 = arith.cmpi ne, %1, %c0_i32_0 : i32
    scf.if %2 {
      %c0_44 = arith.constant 0 : index
      %c0_45 = arith.constant 0 : index
      %95 = vector.load %arg3[%c0_44, %c0_45] : memref<8x32xbf16, #tpu.memory_space<vmem>>, vector<8x32xbf16>
      %c0_46 = arith.constant 0 : index
      %c0_47 = arith.constant 0 : index
      %96 = vector.load %arg4[%c0_46, %c0_47] : memref<32x32xbf16, #tpu.memory_space<vmem>>, vector<32x32xbf16>
      %cst_48 = arith.constant dense<0.000000e+00> : vector<8x32xf32>
      %97 = tpu.matmul %95, %96, %cst_48 {dimension_numbers = #tpu.dot_dimension_numbers<[1], [0], [0], [1], [0, 0, 1, 1], [], []>} : vector<8x32xbf16>, vector<32x32xbf16>, vector<8x32xf32> -> vector<8x32xf32>
      %c0_49 = arith.constant 0 : index
      %c0_50 = arith.constant 0 : index
      %98 = vector.load %arg5[%c0_49, %c0_50] : memref<1x32xf32, #tpu.memory_space<vmem>>, vector<1x32xf32>
      %99 = vector.broadcast %98 : vector<1x32xf32> to vector<8x32xf32>
      %100 = arith.addf %97, %99 : vector<8x32xf32>
      %101 = math.tanh %100 : vector<8x32xf32>
      %102 = arith.truncf %101 : vector<8x32xf32> to vector<8x32xbf16>
      %c0_51 = arith.constant 0 : index
      %c0_52 = arith.constant 0 : index
      %103 = vector.load %arg11[%c0_51, %c0_52] : memref<8x32xbf16, #tpu.memory_space<vmem>>, vector<8x32xbf16>
      tpu.vector_store %arg11[%c0_51, %c0_52], %102 {strides = array<i32>} : memref<8x32xbf16, #tpu.memory_space<vmem>>, vector<8x32xbf16>,
      %cst_53 = arith.constant 0xFF800000 : f32
      %104 = vector.broadcast %cst_53 : f32 to vector<8x1xf32>
      %c0_54 = arith.constant 0 : index
      %c0_55 = arith.constant 0 : index
      %105 = vector.load %arg12[%c0_54, %c0_55] : memref<8x1xf32, #tpu.memory_space<vmem>>, vector<8x1xf32>
      tpu.vector_store %arg12[%c0_54, %c0_55], %104 {strides = array<i32>} : memref<8x1xf32, #tpu.memory_space<vmem>>, vector<8x1xf32>,
      %cst_56 = arith.constant 0.000000e+00 : f32
      %106 = vector.broadcast %cst_56 : f32 to vector<8x1xf32>
      %c0_57 = arith.constant 0 : index
      %c0_58 = arith.constant 0 : index
      %107 = vector.load %arg13[%c0_57, %c0_58] : memref<8x1xf32, #tpu.memory_space<vmem>>, vector<8x1xf32>
      tpu.vector_store %arg13[%c0_57, %c0_58], %106 {strides = array<i32>} : memref<8x1xf32, #tpu.memory_space<vmem>>, vector<8x1xf32>,
      %cst_59 = arith.constant 0.000000e+00 : f32
      %108 = vector.broadcast %cst_59 : f32 to vector<8x1xf32>
      %c0_60 = arith.constant 0 : index
      %c0_61 = arith.constant 0 : index
      %109 = vector.load %arg14[%c0_60, %c0_61] : memref<8x1xf32, #tpu.memory_space<vmem>>, vector<8x1xf32>
      tpu.vector_store %arg14[%c0_60, %c0_61], %108 {strides = array<i32>} : memref<8x1xf32, #tpu.memory_space<vmem>>, vector<8x1xf32>,
      %c0_i32_62 = arith.constant 0 : i32
      %110 = vector.broadcast %c0_i32_62 : i32 to vector<8x1xi32>
      %c0_63 = arith.constant 0 : index
      %c0_64 = arith.constant 0 : index
      %111 = vector.load %arg15[%c0_63, %c0_64] : memref<8x1xi32, #tpu.memory_space<vmem>>, vector<8x1xi32>
      tpu.vector_store %arg15[%c0_63, %c0_64], %110 {strides = array<i32>} : memref<8x1xi32, #tpu.memory_space<vmem>>, vector<8x1xi32>,
      %cst_65 = arith.constant 0xFF800000 : f32
      %112 = vector.broadcast %cst_65 : f32 to vector<8x1xf32>
      %c0_66 = arith.constant 0 : index
      %c0_67 = arith.constant 0 : index
      %113 = vector.load %arg16[%c0_66, %c0_67] : memref<8x1xf32, #tpu.memory_space<vmem>>, vector<8x1xf32>
      tpu.vector_store %arg16[%c0_66, %c0_67], %112 {strides = array<i32>} : memref<8x1xf32, #tpu.memory_space<vmem>>, vector<8x1xf32>,
    } else {
    }
    %c0 = arith.constant 0 : index
    %c0_1 = arith.constant 0 : index
    %3 = vector.load %arg11[%c0, %c0_1] : memref<8x32xbf16, #tpu.memory_space<vmem>>, vector<8x32xbf16>
    %c0_2 = arith.constant 0 : index
    %c0_3 = arith.constant 0 : index
    %4 = vector.load %arg6[%c0_2, %c0_3] : memref<32x128xbf16, #tpu.memory_space<vmem>>, vector<32x128xbf16>
    %cst = arith.constant dense<0.000000e+00> : vector<8x128xf32>
    %5 = tpu.matmul %3, %4, %cst {dimension_numbers = #tpu.dot_dimension_numbers<[1], [0], [0], [1], [0, 0, 1, 1], [], []>} : vector<8x32xbf16>, vector<32x128xbf16>, vector<8x128xf32> -> vector<8x128xf32>
    %c0_4 = arith.constant 0 : index
    %c0_5 = arith.constant 0 : index
    %6 = vector.load %arg7[%c0_4, %c0_5] : memref<1x128xf32, #tpu.memory_space<vmem>>, vector<1x128xf32>
    %7 = vector.broadcast %6 : vector<1x128xf32> to vector<8x128xf32>
    %8 = arith.addf %5, %7 : vector<8x128xf32>
    %9 = arith.truncf %8 : vector<8x128xf32> to vector<8x128xbf16>
    %c0_6 = arith.constant 0 : index
    %c0_7 = arith.constant 0 : index
    %10 = vector.load %arg8[%c0_6, %c0_7] : memref<8x128xbf16, #tpu.memory_space<vmem>>, vector<8x128xbf16>
    tpu.vector_store %arg8[%c0_6, %c0_7], %9 {strides = array<i32>} : memref<8x128xbf16, #tpu.memory_space<vmem>>, vector<8x128xbf16>,
    %c0_8 = arith.constant 0 : index
    %c0_9 = arith.constant 0 : index
    %11 = vector.load %arg12[%c0_8, %c0_9] : memref<8x1xf32, #tpu.memory_space<vmem>>, vector<8x1xf32>
    %cst_10 = arith.constant dense<0xFF800000> : vector<8xf32>
    %12 = vector.multi_reduction <maximumf>, %8, %cst_10 [1] : vector<8x128xf32> to vector<8xf32>
    %13 = vector.shape_cast %12 : vector<8xf32> to vector<8x1xf32>
    %14 = arith.maximumf %11, %13 : vector<8x1xf32>
    %15 = arith.subf %11, %14 : vector<8x1xf32>
    %16 = math.exp %15 : vector<8x1xf32>
    %17 = vector.broadcast %14 : vector<8x1xf32> to vector<8x128xf32>
    %18 = arith.subf %8, %17 : vector<8x128xf32>
    %19 = math.exp %18 : vector<8x128xf32>
    %c0_11 = arith.constant 0 : index
    %c0_12 = arith.constant 0 : index
    %20 = vector.load %arg13[%c0_11, %c0_12] : memref<8x1xf32, #tpu.memory_space<vmem>>, vector<8x1xf32>
    %21 = arith.mulf %16, %20 : vector<8x1xf32>
    %cst_13 = arith.constant dense<0.000000e+00> : vector<8xf32>
    %22 = vector.multi_reduction <add>, %19, %cst_13 [1] : vector<8x128xf32> to vector<8xf32>
    %23 = vector.shape_cast %22 : vector<8xf32> to vector<8x1xf32>
    %24 = arith.addf %21, %23 : vector<8x1xf32>
    %c0_14 = arith.constant 0 : index
    %c0_15 = arith.constant 0 : index
    %25 = vector.load %arg13[%c0_14, %c0_15] : memref<8x1xf32, #tpu.memory_space<vmem>>, vector<8x1xf32>
    tpu.vector_store %arg13[%c0_14, %c0_15], %24 {strides = array<i32>} : memref<8x1xf32, #tpu.memory_space<vmem>>, vector<8x1xf32>,
    %c0_16 = arith.constant 0 : index
    %c0_17 = arith.constant 0 : index
    %26 = vector.load %arg12[%c0_16, %c0_17] : memref<8x1xf32, #tpu.memory_space<vmem>>, vector<8x1xf32>
    tpu.vector_store %arg12[%c0_16, %c0_17], %14 {strides = array<i32>} : memref<8x1xf32, #tpu.memory_space<vmem>>, vector<8x1xf32>,
    %27 = tpu.iota {dimensions = array<i32: 0>} : vector<8x128xi32>
    %c8_i32 = arith.constant 8 : i32
    %28 = arith.muli %arg0, %c8_i32 : i32
    %29 = vector.broadcast %28 : i32 to vector<8x128xi32>
    %30 = arith.addi %27, %29 : vector<8x128xi32>
    %31 = tpu.iota {dimensions = array<i32: 1>} : vector<8x128xi32>
    %c128_i32 = arith.constant 128 : i32
    %32 = arith.muli %arg1, %c128_i32 : i32
    %33 = vector.broadcast %32 : i32 to vector<8x128xi32>
    %34 = arith.addi %31, %33 : vector<8x128xi32>
    %c128_i32_18 = arith.constant 128 : i32
    %35 = vector.broadcast %c128_i32_18 : i32 to vector<8x128xi32>
    %36 = arith.muli %30, %35 : vector<8x128xi32>
    %37 = arith.addi %36, %34 : vector<8x128xi32>
    %c0_19 = arith.constant 0 : index
    %38 = memref.load %arg2[%c0_19] : memref<1xi32, #tpu.memory_space<smem>>
    %39 = vector.broadcast %38 : i32 to vector<8x128xi32>
    %40 = arith.addi %37, %39 : vector<8x128xi32>
    %c16_i32 = arith.constant 16 : i32
    %41 = vector.broadcast %c16_i32 : i32 to vector<8x128xi32>
    %42 = arith.shrui %40, %41 : vector<8x128xi32>
    %43 = arith.xori %40, %42 : vector<8x128xi32>
    %c2146121005_i32 = arith.constant 2146121005 : i32
    %44 = vector.broadcast %c2146121005_i32 : i32 to vector<8x128xi32>
    %45 = arith.muli %43, %44 : vector<8x128xi32>
    %c15_i32 = arith.constant 15 : i32
    %46 = vector.broadcast %c15_i32 : i32 to vector<8x128xi32>
    %47 = arith.shrui %45, %46 : vector<8x128xi32>
    %48 = arith.xori %45, %47 : vector<8x128xi32>
    %c-2073254261_i32 = arith.constant -2073254261 : i32
    %49 = vector.broadcast %c-2073254261_i32 : i32 to vector<8x128xi32>
    %50 = arith.muli %48, %49 : vector<8x128xi32>
    %c16_i32_20 = arith.constant 16 : i32
    %51 = vector.broadcast %c16_i32_20 : i32 to vector<8x128xi32>
    %52 = arith.shrui %50, %51 : vector<8x128xi32>
    %53 = arith.xori %50, %52 : vector<8x128xi32>
    %c8_i32_21 = arith.constant 8 : i32
    %54 = vector.broadcast %c8_i32_21 : i32 to vector<8x128xi32>
    %55 = arith.shrui %53, %54 : vector<8x128xi32>
    %56 = arith.sitofp %55 : vector<8x128xi32> to vector<8x128xf32>
    %cst_22 = arith.constant 5.000000e-01 : f32
    %57 = vector.broadcast %cst_22 : f32 to vector<8x128xf32>
    %58 = arith.addf %56, %57 : vector<8x128xf32>
    %cst_23 = arith.constant 5.96046448E-8 : f32
    %59 = vector.broadcast %cst_23 : f32 to vector<8x128xf32>
    %60 = arith.mulf %58, %59 : vector<8x128xf32>
    %61 = math.log %60 : vector<8x128xf32>
    %cst_24 = arith.constant 0.000000e+00 : f32
    %62 = vector.broadcast %cst_24 : f32 to vector<8x128xf32>
    %63 = arith.subf %62, %61 : vector<8x128xf32>
    %64 = arith.divf %19, %63 : vector<8x128xf32>
    %cst_25 = arith.constant dense<0xFF800000> : vector<8xf32>
    %65 = vector.multi_reduction <maximumf>, %64, %cst_25 [1] : vector<8x128xf32> to vector<8xf32>
    %66 = vector.shape_cast %65 : vector<8xf32> to vector<8x1xf32>
    %67 = vector.broadcast %66 : vector<8x1xf32> to vector<8x128xf32>
    %68 = arith.cmpf oge, %64, %67 : vector<8x128xf32>
    %69 = tpu.iota {dimensions = array<i32: 1>} : vector<8x128xi32>
    %c128_i32_26 = arith.constant 128 : i32
    %70 = arith.muli %arg1, %c128_i32_26 : i32
    %71 = vector.broadcast %70 : i32 to vector<8x128xi32>
    %72 = arith.addi %69, %71 : vector<8x128xi32>
    %c-1_i32 = arith.constant -1 : i32
    %73 = vector.broadcast %c-1_i32 : i32 to vector<8x128xi32>
    %74 = arith.select %68, %72, %73 : vector<8x128xi1>, vector<8x128xi32>
    %cst_27 = arith.constant dense<-2147483648> : vector<8xi32>
    %75 = vector.multi_reduction <maxsi>, %74, %cst_27 [1] : vector<8x128xi32> to vector<8xi32>
    %76 = vector.shape_cast %75 : vector<8xi32> to vector<8x1xi32>
    %cst_28 = arith.constant 0xFF800000 : f32
    %77 = vector.broadcast %cst_28 : f32 to vector<8x128xf32>
    %78 = arith.select %68, %8, %77 : vector<8x128xi1>, vector<8x128xf32>
    %cst_29 = arith.constant dense<0xFF800000> : vector<8xf32>
    %79 = vector.multi_reduction <maximumf>, %78, %cst_29 [1] : vector<8x128xf32> to vector<8xf32>
    %80 = vector.shape_cast %79 : vector<8xf32> to vector<8x1xf32>
    %c0_30 = arith.constant 0 : index
    %c0_31 = arith.constant 0 : index
    %81 = vector.load %arg14[%c0_30, %c0_31] : memref<8x1xf32, #tpu.memory_space<vmem>>, vector<8x1xf32>
    %82 = arith.mulf %81, %16 : vector<8x1xf32>
    %83 = arith.cmpf ogt, %66, %82 : vector<8x1xf32>
    %84 = arith.select %83, %66, %82 : vector<8x1xi1>, vector<8x1xf32>
    %c0_32 = arith.constant 0 : index
    %c0_33 = arith.constant 0 : index
    %85 = vector.load %arg14[%c0_32, %c0_33] : memref<8x1xf32, #tpu.memory_space<vmem>>, vector<8x1xf32>
    tpu.vector_store %arg14[%c0_32, %c0_33], %84 {strides = array<i32>} : memref<8x1xf32, #tpu.memory_space<vmem>>, vector<8x1xf32>,
    %c0_34 = arith.constant 0 : index
    %c0_35 = arith.constant 0 : index
    %86 = vector.load %arg15[%c0_34, %c0_35] : memref<8x1xi32, #tpu.memory_space<vmem>>, vector<8x1xi32>
    %87 = arith.select %83, %76, %86 : vector<8x1xi1>, vector<8x1xi32>
    %c0_36 = arith.constant 0 : index
    %c0_37 = arith.constant 0 : index
    %88 = vector.load %arg15[%c0_36, %c0_37] : memref<8x1xi32, #tpu.memory_space<vmem>>, vector<8x1xi32>
    tpu.vector_store %arg15[%c0_36, %c0_37], %87 {strides = array<i32>} : memref<8x1xi32, #tpu.memory_space<vmem>>, vector<8x1xi32>,
    %c0_38 = arith.constant 0 : index
    %c0_39 = arith.constant 0 : index
    %89 = vector.load %arg16[%c0_38, %c0_39] : memref<8x1xf32, #tpu.memory_space<vmem>>, vector<8x1xf32>
    %90 = arith.select %83, %80, %89 : vector<8x1xi1>, vector<8x1xf32>
    %c0_40 = arith.constant 0 : index
    %c0_41 = arith.constant 0 : index
    %91 = vector.load %arg16[%c0_40, %c0_41] : memref<8x1xf32, #tpu.memory_space<vmem>>, vector<8x1xf32>
    tpu.vector_store %arg16[%c0_40, %c0_41], %90 {strides = array<i32>} : memref<8x1xf32, #tpu.memory_space<vmem>>, vector<8x1xf32>,
    %c0_i32_42 = arith.constant 0 : i32
    %92 = arith.cmpi eq, %arg1, %c0_i32_42 : i32
    %93 = arith.extui %92 : i1 to i32
    %c0_i32_43 = arith.constant 0 : i32
    %94 = arith.cmpi ne, %93, %c0_i32_43 : i32
    scf.if %94 {
      %c0_44 = arith.constant 0 : index
      %c0_45 = arith.constant 0 : index
      %95 = vector.load %arg16[%c0_44, %c0_45] : memref<8x1xf32, #tpu.memory_space<vmem>>, vector<8x1xf32>
      %c0_46 = arith.constant 0 : index
      %c0_47 = arith.constant 0 : index
      %96 = vector.load %arg12[%c0_46, %c0_47] : memref<8x1xf32, #tpu.memory_space<vmem>>, vector<8x1xf32>
      %97 = arith.subf %95, %96 : vector<8x1xf32>
      %98 = math.exp %97 : vector<8x1xf32>
      %c0_48 = arith.constant 0 : index
      %c0_49 = arith.constant 0 : index
      %99 = vector.load %arg13[%c0_48, %c0_49] : memref<8x1xf32, #tpu.memory_space<vmem>>, vector<8x1xf32>
      %100 = arith.divf %98, %99 : vector<8x1xf32>
      %c0_50 = arith.constant 0 : index
      %c0_51 = arith.constant 0 : index
      %101 = vector.load %arg10[%c0_50, %c0_51] : memref<8x1xf32, #tpu.memory_space<vmem>>, vector<8x1xf32>
      tpu.vector_store %arg10[%c0_50, %c0_51], %100 {strides = array<i32>} : memref<8x1xf32, #tpu.memory_space<vmem>>, vector<8x1xf32>,
      %c0_52 = arith.constant 0 : index
      %c0_53 = arith.constant 0 : index
      %102 = vector.load %arg15[%c0_52, %c0_53] : memref<8x1xi32, #tpu.memory_space<vmem>>, vector<8x1xi32>
      %c0_54 = arith.constant 0 : index
      %c0_55 = arith.constant 0 : index
      %103 = vector.load %arg9[%c0_54, %c0_55] : memref<8x1xi32, #tpu.memory_space<vmem>>, vector<8x1xi32>
      tpu.vector_store %arg9[%c0_54, %c0_55], %102 {strides = array<i32>} : memref<8x1xi32, #tpu.memory_space<vmem>>, vector<8x1xi32>,
    } else {
    }
    return
  }
  func.func @transform_0(%arg0: i32, %arg1: i32, %arg2: memref<1xi32, #tpu.memory_space<smem>>) -> (i32, i32) {
    %c0_i32 = arith.constant 0 : i32
    %c0_i32_0 = arith.constant 0 : i32
    return %arg0, %c0_i32 : i32, i32
  }
  func.func @transform_1(%arg0: i32, %arg1: i32, %arg2: memref<1xi32, #tpu.memory_space<smem>>) -> (i32, i32) {
    %c0_i32 = arith.constant 0 : i32
    %c0_i32_0 = arith.constant 0 : i32
    %c0_i32_1 = arith.constant 0 : i32
    return %c0_i32, %c0_i32_0 : i32, i32
  }
  func.func @transform_2(%arg0: i32, %arg1: i32, %arg2: memref<1xi32, #tpu.memory_space<smem>>) -> (i32, i32) {
    %c0_i32 = arith.constant 0 : i32
    %c0_i32_0 = arith.constant 0 : i32
    %c0_i32_1 = arith.constant 0 : i32
    return %c0_i32, %c0_i32_0 : i32, i32
  }
  func.func @transform_3(%arg0: i32, %arg1: i32, %arg2: memref<1xi32, #tpu.memory_space<smem>>) -> (i32, i32) {
    %c0_i32 = arith.constant 0 : i32
    %c0_i32_0 = arith.constant 0 : i32
    return %c0_i32, %arg1 : i32, i32
  }
  func.func @transform_4(%arg0: i32, %arg1: i32, %arg2: memref<1xi32, #tpu.memory_space<smem>>) -> (i32, i32) {
    %c0_i32 = arith.constant 0 : i32
    %c0_i32_0 = arith.constant 0 : i32
    return %c0_i32, %arg1 : i32, i32
  }
  func.func @transform_5(%arg0: i32, %arg1: i32, %arg2: memref<1xi32, #tpu.memory_space<smem>>) -> (i32, i32) {
    %c0_i32 = arith.constant 0 : i32
    return %arg0, %arg1 : i32, i32
  }
  func.func @transform_6(%arg0: i32, %arg1: i32, %arg2: memref<1xi32, #tpu.memory_space<smem>>) -> (i32, i32) {
    %c0_i32 = arith.constant 0 : i32
    %c0_i32_0 = arith.constant 0 : i32
    return %arg0, %c0_i32 : i32, i32
  }
  func.func @transform_7(%arg0: i32, %arg1: i32, %arg2: memref<1xi32, #tpu.memory_space<smem>>) -> (i32, i32) {
    %c0_i32 = arith.constant 0 : i32
    %c0_i32_0 = arith.constant 0 : i32
    return %arg0, %c0_i32 : i32, i32
  }
}

module attributes {stable_mosaic.version = 11 : i64} {
  func.func @kernel(%arg0: i32, %arg1: i32, %arg2: memref<1xi32, #tpu.memory_space<smem>>, %arg3: memref<8x32xbf16, #tpu.memory_space<vmem>>, %arg4: memref<32x32xbf16, #tpu.memory_space<vmem>>, %arg5: memref<1x32xf32, #tpu.memory_space<vmem>>, %arg6: memref<32x128xbf16, #tpu.memory_space<vmem>>, %arg7: memref<1x128xf32, #tpu.memory_space<vmem>>, %arg8: memref<8x1xi32, #tpu.memory_space<vmem>>, %arg9: memref<8x1xf32, #tpu.memory_space<vmem>>, %arg10: memref<8x32xbf16, #tpu.memory_space<vmem>>, %arg11: memref<8x1xf32, #tpu.memory_space<vmem>>, %arg12: memref<8x1xf32, #tpu.memory_space<vmem>>, %arg13: memref<8x1xf32, #tpu.memory_space<vmem>>, %arg14: memref<8x1xi32, #tpu.memory_space<vmem>>, %arg15: memref<8x1xf32, #tpu.memory_space<vmem>>) attributes {dimension_semantics = [#tpu.dimension_semantics<parallel>, #tpu.dimension_semantics<arbitrary>], iteration_bounds = array<i64: 1, 1>, scalar_prefetch = 1 : i64, scratch_operands = 6 : i64, tpu.core_type = #tpu.core_type<tc>, window_params = [{transform_indices = @transform_0, window_bounds = array<i64: 8, 32>}, {pipeline_mode = #tpu.pipeline_mode<synchronous>, transform_indices = @transform_1, window_bounds = array<i64: 32, 32>}, {pipeline_mode = #tpu.pipeline_mode<synchronous>, transform_indices = @transform_2, window_bounds = array<i64: 1, 32>}, {transform_indices = @transform_3, window_bounds = array<i64: 32, 128>}, {transform_indices = @transform_4, window_bounds = array<i64: 1, 128>}, {transform_indices = @transform_5, window_bounds = array<i64: 8, 1>}, {transform_indices = @transform_6, window_bounds = array<i64: 8, 1>}]} {
    %c0_i32 = arith.constant 0 : i32
    %0 = arith.cmpi eq, %arg1, %c0_i32 : i32
    %1 = arith.extui %0 : i1 to i32
    %c0_i32_0 = arith.constant 0 : i32
    %2 = arith.cmpi ne, %1, %c0_i32_0 : i32
    scf.if %2 {
      %c0_42 = arith.constant 0 : index
      %c0_43 = arith.constant 0 : index
      %93 = vector.load %arg3[%c0_42, %c0_43] : memref<8x32xbf16, #tpu.memory_space<vmem>>, vector<8x32xbf16>
      %c0_44 = arith.constant 0 : index
      %c0_45 = arith.constant 0 : index
      %94 = vector.load %arg4[%c0_44, %c0_45] : memref<32x32xbf16, #tpu.memory_space<vmem>>, vector<32x32xbf16>
      %cst_46 = arith.constant dense<0.000000e+00> : vector<8x32xf32>
      %95 = tpu.matmul %93, %94, %cst_46 {dimension_numbers = #tpu.dot_dimension_numbers<[1], [0], [0], [1], [0, 0, 1, 1], [], []>} : vector<8x32xbf16>, vector<32x32xbf16>, vector<8x32xf32> -> vector<8x32xf32>
      %c0_47 = arith.constant 0 : index
      %c0_48 = arith.constant 0 : index
      %96 = vector.load %arg5[%c0_47, %c0_48] : memref<1x32xf32, #tpu.memory_space<vmem>>, vector<1x32xf32>
      %97 = vector.broadcast %96 : vector<1x32xf32> to vector<8x32xf32>
      %98 = arith.addf %95, %97 : vector<8x32xf32>
      %99 = math.tanh %98 : vector<8x32xf32>
      %100 = arith.truncf %99 : vector<8x32xf32> to vector<8x32xbf16>
      %c0_49 = arith.constant 0 : index
      %c0_50 = arith.constant 0 : index
      %101 = vector.load %arg10[%c0_49, %c0_50] : memref<8x32xbf16, #tpu.memory_space<vmem>>, vector<8x32xbf16>
      tpu.vector_store %arg10[%c0_49, %c0_50], %100 {strides = array<i32>} : memref<8x32xbf16, #tpu.memory_space<vmem>>, vector<8x32xbf16>,
      %cst_51 = arith.constant 0xFF800000 : f32
      %102 = vector.broadcast %cst_51 : f32 to vector<8x1xf32>
      %c0_52 = arith.constant 0 : index
      %c0_53 = arith.constant 0 : index
      %103 = vector.load %arg11[%c0_52, %c0_53] : memref<8x1xf32, #tpu.memory_space<vmem>>, vector<8x1xf32>
      tpu.vector_store %arg11[%c0_52, %c0_53], %102 {strides = array<i32>} : memref<8x1xf32, #tpu.memory_space<vmem>>, vector<8x1xf32>,
      %cst_54 = arith.constant 0.000000e+00 : f32
      %104 = vector.broadcast %cst_54 : f32 to vector<8x1xf32>
      %c0_55 = arith.constant 0 : index
      %c0_56 = arith.constant 0 : index
      %105 = vector.load %arg12[%c0_55, %c0_56] : memref<8x1xf32, #tpu.memory_space<vmem>>, vector<8x1xf32>
      tpu.vector_store %arg12[%c0_55, %c0_56], %104 {strides = array<i32>} : memref<8x1xf32, #tpu.memory_space<vmem>>, vector<8x1xf32>,
      %cst_57 = arith.constant 0.000000e+00 : f32
      %106 = vector.broadcast %cst_57 : f32 to vector<8x1xf32>
      %c0_58 = arith.constant 0 : index
      %c0_59 = arith.constant 0 : index
      %107 = vector.load %arg13[%c0_58, %c0_59] : memref<8x1xf32, #tpu.memory_space<vmem>>, vector<8x1xf32>
      tpu.vector_store %arg13[%c0_58, %c0_59], %106 {strides = array<i32>} : memref<8x1xf32, #tpu.memory_space<vmem>>, vector<8x1xf32>,
      %c0_i32_60 = arith.constant 0 : i32
      %108 = vector.broadcast %c0_i32_60 : i32 to vector<8x1xi32>
      %c0_61 = arith.constant 0 : index
      %c0_62 = arith.constant 0 : index
      %109 = vector.load %arg14[%c0_61, %c0_62] : memref<8x1xi32, #tpu.memory_space<vmem>>, vector<8x1xi32>
      tpu.vector_store %arg14[%c0_61, %c0_62], %108 {strides = array<i32>} : memref<8x1xi32, #tpu.memory_space<vmem>>, vector<8x1xi32>,
      %cst_63 = arith.constant 0xFF800000 : f32
      %110 = vector.broadcast %cst_63 : f32 to vector<8x1xf32>
      %c0_64 = arith.constant 0 : index
      %c0_65 = arith.constant 0 : index
      %111 = vector.load %arg15[%c0_64, %c0_65] : memref<8x1xf32, #tpu.memory_space<vmem>>, vector<8x1xf32>
      tpu.vector_store %arg15[%c0_64, %c0_65], %110 {strides = array<i32>} : memref<8x1xf32, #tpu.memory_space<vmem>>, vector<8x1xf32>,
    } else {
    }
    %c0 = arith.constant 0 : index
    %c0_1 = arith.constant 0 : index
    %3 = vector.load %arg10[%c0, %c0_1] : memref<8x32xbf16, #tpu.memory_space<vmem>>, vector<8x32xbf16>
    %c0_2 = arith.constant 0 : index
    %c0_3 = arith.constant 0 : index
    %4 = vector.load %arg6[%c0_2, %c0_3] : memref<32x128xbf16, #tpu.memory_space<vmem>>, vector<32x128xbf16>
    %cst = arith.constant dense<0.000000e+00> : vector<8x128xf32>
    %5 = tpu.matmul %3, %4, %cst {dimension_numbers = #tpu.dot_dimension_numbers<[1], [0], [0], [1], [0, 0, 1, 1], [], []>} : vector<8x32xbf16>, vector<32x128xbf16>, vector<8x128xf32> -> vector<8x128xf32>
    %c0_4 = arith.constant 0 : index
    %c0_5 = arith.constant 0 : index
    %6 = vector.load %arg7[%c0_4, %c0_5] : memref<1x128xf32, #tpu.memory_space<vmem>>, vector<1x128xf32>
    %7 = vector.broadcast %6 : vector<1x128xf32> to vector<8x128xf32>
    %8 = arith.addf %5, %7 : vector<8x128xf32>
    %c0_6 = arith.constant 0 : index
    %c0_7 = arith.constant 0 : index
    %9 = vector.load %arg11[%c0_6, %c0_7] : memref<8x1xf32, #tpu.memory_space<vmem>>, vector<8x1xf32>
    %cst_8 = arith.constant dense<0xFF800000> : vector<8xf32>
    %10 = vector.multi_reduction <maximumf>, %8, %cst_8 [1] : vector<8x128xf32> to vector<8xf32>
    %11 = vector.shape_cast %10 : vector<8xf32> to vector<8x1xf32>
    %12 = arith.maximumf %9, %11 : vector<8x1xf32>
    %13 = arith.subf %9, %12 : vector<8x1xf32>
    %14 = math.exp %13 : vector<8x1xf32>
    %15 = vector.broadcast %12 : vector<8x1xf32> to vector<8x128xf32>
    %16 = arith.subf %8, %15 : vector<8x128xf32>
    %17 = math.exp %16 : vector<8x128xf32>
    %c0_9 = arith.constant 0 : index
    %c0_10 = arith.constant 0 : index
    %18 = vector.load %arg12[%c0_9, %c0_10] : memref<8x1xf32, #tpu.memory_space<vmem>>, vector<8x1xf32>
    %19 = arith.mulf %14, %18 : vector<8x1xf32>
    %cst_11 = arith.constant dense<0.000000e+00> : vector<8xf32>
    %20 = vector.multi_reduction <add>, %17, %cst_11 [1] : vector<8x128xf32> to vector<8xf32>
    %21 = vector.shape_cast %20 : vector<8xf32> to vector<8x1xf32>
    %22 = arith.addf %19, %21 : vector<8x1xf32>
    %c0_12 = arith.constant 0 : index
    %c0_13 = arith.constant 0 : index
    %23 = vector.load %arg12[%c0_12, %c0_13] : memref<8x1xf32, #tpu.memory_space<vmem>>, vector<8x1xf32>
    tpu.vector_store %arg12[%c0_12, %c0_13], %22 {strides = array<i32>} : memref<8x1xf32, #tpu.memory_space<vmem>>, vector<8x1xf32>,
    %c0_14 = arith.constant 0 : index
    %c0_15 = arith.constant 0 : index
    %24 = vector.load %arg11[%c0_14, %c0_15] : memref<8x1xf32, #tpu.memory_space<vmem>>, vector<8x1xf32>
    tpu.vector_store %arg11[%c0_14, %c0_15], %12 {strides = array<i32>} : memref<8x1xf32, #tpu.memory_space<vmem>>, vector<8x1xf32>,
    %25 = tpu.iota {dimensions = array<i32: 0>} : vector<8x128xi32>
    %c8_i32 = arith.constant 8 : i32
    %26 = arith.muli %arg0, %c8_i32 : i32
    %27 = vector.broadcast %26 : i32 to vector<8x128xi32>
    %28 = arith.addi %25, %27 : vector<8x128xi32>
    %29 = tpu.iota {dimensions = array<i32: 1>} : vector<8x128xi32>
    %c128_i32 = arith.constant 128 : i32
    %30 = arith.muli %arg1, %c128_i32 : i32
    %31 = vector.broadcast %30 : i32 to vector<8x128xi32>
    %32 = arith.addi %29, %31 : vector<8x128xi32>
    %c128_i32_16 = arith.constant 128 : i32
    %33 = vector.broadcast %c128_i32_16 : i32 to vector<8x128xi32>
    %34 = arith.muli %28, %33 : vector<8x128xi32>
    %35 = arith.addi %34, %32 : vector<8x128xi32>
    %c0_17 = arith.constant 0 : index
    %36 = memref.load %arg2[%c0_17] : memref<1xi32, #tpu.memory_space<smem>>
    %37 = vector.broadcast %36 : i32 to vector<8x128xi32>
    %38 = arith.addi %35, %37 : vector<8x128xi32>
    %c16_i32 = arith.constant 16 : i32
    %39 = vector.broadcast %c16_i32 : i32 to vector<8x128xi32>
    %40 = arith.shrui %38, %39 : vector<8x128xi32>
    %41 = arith.xori %38, %40 : vector<8x128xi32>
    %c2146121005_i32 = arith.constant 2146121005 : i32
    %42 = vector.broadcast %c2146121005_i32 : i32 to vector<8x128xi32>
    %43 = arith.muli %41, %42 : vector<8x128xi32>
    %c15_i32 = arith.constant 15 : i32
    %44 = vector.broadcast %c15_i32 : i32 to vector<8x128xi32>
    %45 = arith.shrui %43, %44 : vector<8x128xi32>
    %46 = arith.xori %43, %45 : vector<8x128xi32>
    %c-2073254261_i32 = arith.constant -2073254261 : i32
    %47 = vector.broadcast %c-2073254261_i32 : i32 to vector<8x128xi32>
    %48 = arith.muli %46, %47 : vector<8x128xi32>
    %c16_i32_18 = arith.constant 16 : i32
    %49 = vector.broadcast %c16_i32_18 : i32 to vector<8x128xi32>
    %50 = arith.shrui %48, %49 : vector<8x128xi32>
    %51 = arith.xori %48, %50 : vector<8x128xi32>
    %c8_i32_19 = arith.constant 8 : i32
    %52 = vector.broadcast %c8_i32_19 : i32 to vector<8x128xi32>
    %53 = arith.shrui %51, %52 : vector<8x128xi32>
    %54 = arith.sitofp %53 : vector<8x128xi32> to vector<8x128xf32>
    %cst_20 = arith.constant 5.000000e-01 : f32
    %55 = vector.broadcast %cst_20 : f32 to vector<8x128xf32>
    %56 = arith.addf %54, %55 : vector<8x128xf32>
    %cst_21 = arith.constant 5.96046448E-8 : f32
    %57 = vector.broadcast %cst_21 : f32 to vector<8x128xf32>
    %58 = arith.mulf %56, %57 : vector<8x128xf32>
    %59 = math.log %58 : vector<8x128xf32>
    %cst_22 = arith.constant 0.000000e+00 : f32
    %60 = vector.broadcast %cst_22 : f32 to vector<8x128xf32>
    %61 = arith.subf %60, %59 : vector<8x128xf32>
    %62 = arith.divf %17, %61 : vector<8x128xf32>
    %cst_23 = arith.constant dense<0xFF800000> : vector<8xf32>
    %63 = vector.multi_reduction <maximumf>, %62, %cst_23 [1] : vector<8x128xf32> to vector<8xf32>
    %64 = vector.shape_cast %63 : vector<8xf32> to vector<8x1xf32>
    %65 = vector.broadcast %64 : vector<8x1xf32> to vector<8x128xf32>
    %66 = arith.cmpf oge, %62, %65 : vector<8x128xf32>
    %67 = tpu.iota {dimensions = array<i32: 1>} : vector<8x128xi32>
    %c128_i32_24 = arith.constant 128 : i32
    %68 = arith.muli %arg1, %c128_i32_24 : i32
    %69 = vector.broadcast %68 : i32 to vector<8x128xi32>
    %70 = arith.addi %67, %69 : vector<8x128xi32>
    %c-1_i32 = arith.constant -1 : i32
    %71 = vector.broadcast %c-1_i32 : i32 to vector<8x128xi32>
    %72 = arith.select %66, %70, %71 : vector<8x128xi1>, vector<8x128xi32>
    %cst_25 = arith.constant dense<-2147483648> : vector<8xi32>
    %73 = vector.multi_reduction <maxsi>, %72, %cst_25 [1] : vector<8x128xi32> to vector<8xi32>
    %74 = vector.shape_cast %73 : vector<8xi32> to vector<8x1xi32>
    %cst_26 = arith.constant 0xFF800000 : f32
    %75 = vector.broadcast %cst_26 : f32 to vector<8x128xf32>
    %76 = arith.select %66, %8, %75 : vector<8x128xi1>, vector<8x128xf32>
    %cst_27 = arith.constant dense<0xFF800000> : vector<8xf32>
    %77 = vector.multi_reduction <maximumf>, %76, %cst_27 [1] : vector<8x128xf32> to vector<8xf32>
    %78 = vector.shape_cast %77 : vector<8xf32> to vector<8x1xf32>
    %c0_28 = arith.constant 0 : index
    %c0_29 = arith.constant 0 : index
    %79 = vector.load %arg13[%c0_28, %c0_29] : memref<8x1xf32, #tpu.memory_space<vmem>>, vector<8x1xf32>
    %80 = arith.mulf %79, %14 : vector<8x1xf32>
    %81 = arith.cmpf ogt, %64, %80 : vector<8x1xf32>
    %82 = arith.select %81, %64, %80 : vector<8x1xi1>, vector<8x1xf32>
    %c0_30 = arith.constant 0 : index
    %c0_31 = arith.constant 0 : index
    %83 = vector.load %arg13[%c0_30, %c0_31] : memref<8x1xf32, #tpu.memory_space<vmem>>, vector<8x1xf32>
    tpu.vector_store %arg13[%c0_30, %c0_31], %82 {strides = array<i32>} : memref<8x1xf32, #tpu.memory_space<vmem>>, vector<8x1xf32>,
    %c0_32 = arith.constant 0 : index
    %c0_33 = arith.constant 0 : index
    %84 = vector.load %arg14[%c0_32, %c0_33] : memref<8x1xi32, #tpu.memory_space<vmem>>, vector<8x1xi32>
    %85 = arith.select %81, %74, %84 : vector<8x1xi1>, vector<8x1xi32>
    %c0_34 = arith.constant 0 : index
    %c0_35 = arith.constant 0 : index
    %86 = vector.load %arg14[%c0_34, %c0_35] : memref<8x1xi32, #tpu.memory_space<vmem>>, vector<8x1xi32>
    tpu.vector_store %arg14[%c0_34, %c0_35], %85 {strides = array<i32>} : memref<8x1xi32, #tpu.memory_space<vmem>>, vector<8x1xi32>,
    %c0_36 = arith.constant 0 : index
    %c0_37 = arith.constant 0 : index
    %87 = vector.load %arg15[%c0_36, %c0_37] : memref<8x1xf32, #tpu.memory_space<vmem>>, vector<8x1xf32>
    %88 = arith.select %81, %78, %87 : vector<8x1xi1>, vector<8x1xf32>
    %c0_38 = arith.constant 0 : index
    %c0_39 = arith.constant 0 : index
    %89 = vector.load %arg15[%c0_38, %c0_39] : memref<8x1xf32, #tpu.memory_space<vmem>>, vector<8x1xf32>
    tpu.vector_store %arg15[%c0_38, %c0_39], %88 {strides = array<i32>} : memref<8x1xf32, #tpu.memory_space<vmem>>, vector<8x1xf32>,
    %c0_i32_40 = arith.constant 0 : i32
    %90 = arith.cmpi eq, %arg1, %c0_i32_40 : i32
    %91 = arith.extui %90 : i1 to i32
    %c0_i32_41 = arith.constant 0 : i32
    %92 = arith.cmpi ne, %91, %c0_i32_41 : i32
    scf.if %92 {
      %c0_42 = arith.constant 0 : index
      %c0_43 = arith.constant 0 : index
      %93 = vector.load %arg15[%c0_42, %c0_43] : memref<8x1xf32, #tpu.memory_space<vmem>>, vector<8x1xf32>
      %c0_44 = arith.constant 0 : index
      %c0_45 = arith.constant 0 : index
      %94 = vector.load %arg11[%c0_44, %c0_45] : memref<8x1xf32, #tpu.memory_space<vmem>>, vector<8x1xf32>
      %95 = arith.subf %93, %94 : vector<8x1xf32>
      %96 = math.exp %95 : vector<8x1xf32>
      %c0_46 = arith.constant 0 : index
      %c0_47 = arith.constant 0 : index
      %97 = vector.load %arg12[%c0_46, %c0_47] : memref<8x1xf32, #tpu.memory_space<vmem>>, vector<8x1xf32>
      %98 = arith.divf %96, %97 : vector<8x1xf32>
      %c0_48 = arith.constant 0 : index
      %c0_49 = arith.constant 0 : index
      %99 = vector.load %arg9[%c0_48, %c0_49] : memref<8x1xf32, #tpu.memory_space<vmem>>, vector<8x1xf32>
      tpu.vector_store %arg9[%c0_48, %c0_49], %98 {strides = array<i32>} : memref<8x1xf32, #tpu.memory_space<vmem>>, vector<8x1xf32>,
      %c0_50 = arith.constant 0 : index
      %c0_51 = arith.constant 0 : index
      %100 = vector.load %arg14[%c0_50, %c0_51] : memref<8x1xi32, #tpu.memory_space<vmem>>, vector<8x1xi32>
      %c0_52 = arith.constant 0 : index
      %c0_53 = arith.constant 0 : index
      %101 = vector.load %arg8[%c0_52, %c0_53] : memref<8x1xi32, #tpu.memory_space<vmem>>, vector<8x1xi32>
      tpu.vector_store %arg8[%c0_52, %c0_53], %100 {strides = array<i32>} : memref<8x1xi32, #tpu.memory_space<vmem>>, vector<8x1xi32>,
    } else {
    }
    return
  }
  func.func @transform_0(%arg0: i32, %arg1: i32, %arg2: memref<1xi32, #tpu.memory_space<smem>>) -> (i32, i32) {
    %c0_i32 = arith.constant 0 : i32
    %c0_i32_0 = arith.constant 0 : i32
    return %arg0, %c0_i32 : i32, i32
  }
  func.func @transform_1(%arg0: i32, %arg1: i32, %arg2: memref<1xi32, #tpu.memory_space<smem>>) -> (i32, i32) {
    %c0_i32 = arith.constant 0 : i32
    %c0_i32_0 = arith.constant 0 : i32
    %c0_i32_1 = arith.constant 0 : i32
    return %c0_i32, %c0_i32_0 : i32, i32
  }
  func.func @transform_2(%arg0: i32, %arg1: i32, %arg2: memref<1xi32, #tpu.memory_space<smem>>) -> (i32, i32) {
    %c0_i32 = arith.constant 0 : i32
    %c0_i32_0 = arith.constant 0 : i32
    %c0_i32_1 = arith.constant 0 : i32
    return %c0_i32, %c0_i32_0 : i32, i32
  }
  func.func @transform_3(%arg0: i32, %arg1: i32, %arg2: memref<1xi32, #tpu.memory_space<smem>>) -> (i32, i32) {
    %c0_i32 = arith.constant 0 : i32
    %c0_i32_0 = arith.constant 0 : i32
    return %c0_i32, %arg1 : i32, i32
  }
  func.func @transform_4(%arg0: i32, %arg1: i32, %arg2: memref<1xi32, #tpu.memory_space<smem>>) -> (i32, i32) {
    %c0_i32 = arith.constant 0 : i32
    %c0_i32_0 = arith.constant 0 : i32
    return %c0_i32, %arg1 : i32, i32
  }
  func.func @transform_5(%arg0: i32, %arg1: i32, %arg2: memref<1xi32, #tpu.memory_space<smem>>) -> (i32, i32) {
    %c0_i32 = arith.constant 0 : i32
    %c0_i32_0 = arith.constant 0 : i32
    return %arg0, %c0_i32 : i32, i32
  }
  func.func @transform_6(%arg0: i32, %arg1: i32, %arg2: memref<1xi32, #tpu.memory_space<smem>>) -> (i32, i32) {
    %c0_i32 = arith.constant 0 : i32
    %c0_i32_0 = arith.constant 0 : i32
    return %arg0, %c0_i32 : i32, i32
  }
}

module attributes {stable_mosaic.version = 11 : i64} {
  func.func @critic_kernel(%arg0: i32, %arg1: memref<2x8x32xbf16, #tpu.memory_space<vmem>>, %arg2: memref<2x8xbf16, #tpu.memory_space<vmem>>, %arg3: memref<32x32xbf16, #tpu.memory_space<vmem>>, %arg4: memref<1x32xf32, #tpu.memory_space<vmem>>, %arg5: memref<32x128xbf16, #tpu.memory_space<vmem>>, %arg6: memref<1x128xf32, #tpu.memory_space<vmem>>, %arg7: memref<2x128xf32, #tpu.memory_space<vmem>>) attributes {dimension_semantics = [#tpu.dimension_semantics<parallel>], iteration_bounds = array<i64: 1>, scalar_prefetch = 0 : i64, scratch_operands = 0 : i64, tpu.core_type = #tpu.core_type<tc>, window_params = [{transform_indices = @transform_0, window_bounds = array<i64: 2, 8, 32>}, {transform_indices = @transform_1, window_bounds = array<i64: 2, 8>}, {pipeline_mode = #tpu.pipeline_mode<synchronous>, transform_indices = @transform_2, window_bounds = array<i64: 32, 32>}, {pipeline_mode = #tpu.pipeline_mode<synchronous>, transform_indices = @transform_3, window_bounds = array<i64: 1, 32>}, {pipeline_mode = #tpu.pipeline_mode<synchronous>, transform_indices = @transform_4, window_bounds = array<i64: 32, 128>}, {pipeline_mode = #tpu.pipeline_mode<synchronous>, transform_indices = @transform_5, window_bounds = array<i64: 1, 128>}, {transform_indices = @transform_6, window_bounds = array<i64: 2, 128>}]} {
    %c0 = arith.constant 0 : index
    %c0_0 = arith.constant 0 : index
    %0 = vector.load %arg2[%c0, %c0_0] : memref<2x8xbf16, #tpu.memory_space<vmem>>, vector<2x8xbf16>
    %c0_1 = arith.constant 0 : index
    %c0_2 = arith.constant 0 : index
    %c0_3 = arith.constant 0 : index
    %1 = vector.load %arg1[%c0_1, %c0_2, %c0_3] : memref<2x8x32xbf16, #tpu.memory_space<vmem>>, vector<2x8x32xbf16>
    %2 = vector.shape_cast %0 : vector<2x8xbf16> to vector<2x1x8xbf16>
    "tpu.trace_start"() <{level = 10 : i32, message = "bqs,bse->bqe"}> : () -> ()
    %cst = arith.constant dense<0.000000e+00> : vector<2x1x32xf32>
    %3 = tpu.matmul %2, %1, %cst {dimension_numbers = #tpu.dot_dimension_numbers<[2], [1], [1], [2], [0, 0, 0, 1, 1, 2], [0], [0]>} : vector<2x1x8xbf16>, vector<2x8x32xbf16>, vector<2x1x32xf32> -> vector<2x1x32xf32>
    "tpu.trace_stop"() : () -> ()
    %4 = vector.shape_cast %3 : vector<2x1x32xf32> to vector<2x32xf32>
    %5 = arith.extf %0 : vector<2x8xbf16> to vector<2x8xf32>
    %cst_4 = arith.constant dense<0.000000e+00> : vector<2xf32>
    %6 = vector.multi_reduction <add>, %5, %cst_4 [1] : vector<2x8xf32> to vector<2xf32>
    %7 = vector.shape_cast %6 : vector<2xf32> to vector<2x1xf32>
    %cst_5 = arith.constant 1.000000e+00 : f32
    %8 = vector.broadcast %cst_5 : f32 to vector<2x1xf32>
    %9 = arith.maximumf %7, %8 : vector<2x1xf32>
    %10 = vector.broadcast %9 : vector<2x1xf32> to vector<2x32xf32>
    %11 = arith.divf %4, %10 : vector<2x32xf32>
    %12 = arith.truncf %11 : vector<2x32xf32> to vector<2x32xbf16>
    %c0_6 = arith.constant 0 : index
    %c0_7 = arith.constant 0 : index
    %13 = vector.load %arg3[%c0_6, %c0_7] : memref<32x32xbf16, #tpu.memory_space<vmem>>, vector<32x32xbf16>
    %cst_8 = arith.constant dense<0.000000e+00> : vector<2x32xf32>
    %14 = tpu.matmul %12, %13, %cst_8 {dimension_numbers = #tpu.dot_dimension_numbers<[1], [0], [0], [1], [0, 0, 1, 1], [], []>} : vector<2x32xbf16>, vector<32x32xbf16>, vector<2x32xf32> -> vector<2x32xf32>
    %c0_9 = arith.constant 0 : index
    %c0_10 = arith.constant 0 : index
    %15 = vector.load %arg4[%c0_9, %c0_10] : memref<1x32xf32, #tpu.memory_space<vmem>>, vector<1x32xf32>
    %16 = vector.broadcast %15 : vector<1x32xf32> to vector<2x32xf32>
    %17 = arith.addf %14, %16 : vector<2x32xf32>
    %18 = math.tanh %17 : vector<2x32xf32>
    %19 = arith.truncf %18 : vector<2x32xf32> to vector<2x32xbf16>
    %c0_11 = arith.constant 0 : index
    %c0_12 = arith.constant 0 : index
    %20 = vector.load %arg5[%c0_11, %c0_12] : memref<32x128xbf16, #tpu.memory_space<vmem>>, vector<32x128xbf16>
    %cst_13 = arith.constant dense<0.000000e+00> : vector<2x128xf32>
    %21 = tpu.matmul %19, %20, %cst_13 {dimension_numbers = #tpu.dot_dimension_numbers<[1], [0], [0], [1], [0, 0, 1, 1], [], []>} : vector<2x32xbf16>, vector<32x128xbf16>, vector<2x128xf32> -> vector<2x128xf32>
    %c0_14 = arith.constant 0 : index
    %c0_15 = arith.constant 0 : index
    %22 = vector.load %arg6[%c0_14, %c0_15] : memref<1x128xf32, #tpu.memory_space<vmem>>, vector<1x128xf32>
    %23 = vector.broadcast %22 : vector<1x128xf32> to vector<2x128xf32>
    %24 = arith.addf %21, %23 : vector<2x128xf32>
    %c0_16 = arith.constant 0 : index
    %c0_17 = arith.constant 0 : index
    %25 = vector.load %arg7[%c0_16, %c0_17] : memref<2x128xf32, #tpu.memory_space<vmem>>, vector<2x128xf32>
    tpu.vector_store %arg7[%c0_16, %c0_17], %24 {strides = array<i32>} : memref<2x128xf32, #tpu.memory_space<vmem>>, vector<2x128xf32>,
    return
  }
  func.func @transform_0(%arg0: i32) -> (i32, i32, i32) {
    %c0_i32 = arith.constant 0 : i32
    %c0_i32_0 = arith.constant 0 : i32
    %c0_i32_1 = arith.constant 0 : i32
    return %arg0, %c0_i32, %c0_i32_0 : i32, i32, i32
  }
  func.func @transform_1(%arg0: i32) -> (i32, i32) {
    %c0_i32 = arith.constant 0 : i32
    %c0_i32_0 = arith.constant 0 : i32
    return %arg0, %c0_i32 : i32, i32
  }
  func.func @transform_2(%arg0: i32) -> (i32, i32) {
    %c0_i32 = arith.constant 0 : i32
    %c0_i32_0 = arith.constant 0 : i32
    %c0_i32_1 = arith.constant 0 : i32
    return %c0_i32, %c0_i32_0 : i32, i32
  }
  func.func @transform_3(%arg0: i32) -> (i32, i32) {
    %c0_i32 = arith.constant 0 : i32
    %c0_i32_0 = arith.constant 0 : i32
    %c0_i32_1 = arith.constant 0 : i32
    return %c0_i32, %c0_i32_0 : i32, i32
  }
  func.func @transform_4(%arg0: i32) -> (i32, i32) {
    %c0_i32 = arith.constant 0 : i32
    %c0_i32_0 = arith.constant 0 : i32
    %c0_i32_1 = arith.constant 0 : i32
    return %c0_i32, %c0_i32_0 : i32, i32
  }
  func.func @transform_5(%arg0: i32) -> (i32, i32) {
    %c0_i32 = arith.constant 0 : i32
    %c0_i32_0 = arith.constant 0 : i32
    %c0_i32_1 = arith.constant 0 : i32
    return %c0_i32, %c0_i32_0 : i32, i32
  }
  func.func @transform_6(%arg0: i32) -> (i32, i32) {
    %c0_i32 = arith.constant 0 : i32
    %c0_i32_0 = arith.constant 0 : i32
    return %arg0, %c0_i32 : i32, i32
  }
}

</mosaic_0001>

<bundles_post_ra>
// kernel: squeeze.20
= control target key start
LH: loop header
LB: loop body
LE: loop exit
PB: predicated region body
PF: predicated region fallthrough
CT: control target
= control target key end

     0   :  { %vm7_vm0 = vcmask 31744   ;;  %s39_s0 = inlined_call_operand.vmem [shape: s32[8], index: 0, kind: input, shape index: {}]   ;;  %s40_s1 = inlined_call_operand.vmem [shape: s32[2,4], index: 1, kind: output, shape index: {}]  }
   0x1   :  { %v4_v0 = vld [vmem:[%s39_s0] sm:$0x1]  ;;  %s22_s0 = smov 124  }
   0x2   :  { %5 = vst [vmem:[#allocation1] sm:$0x1] %v4_v0 }
   0x9   :  { %v9_v1 = vld [vmem:[#allocation1] sm:$0x1]  }
   0xa   :  { %v6_v2 = vld [vmem:[#allocation1] sm:$0x1]   ;;  %10 = vrot.lane.b32.xlu0 %v9_v1, %s22_s0 }
   0xb   :  { %8 = vst.msk [vmem:[#allocation0] sm:$0x1] %vm7_vm0, %v6_v2  }
  0x7c   :  { %v11_v3 = vpop.permute.xlu0 %10  }
  0x7d   :  { %14 = vst.msk [vmem:[#allocation0 + $0x1] sm:$0x1] %vm7_vm0, %v11_v3  }
  0x84   :  { %v18_v4 = vld [vmem:[#allocation0] sm:$0x3] }
  0x85   :  { %20 = vst [vmem:[%s40_s1] sm:$0x3] %v18_v4 }

// kernel: squeeze.21
= control target key start
LH: loop header
LB: loop body
LE: loop exit
PB: predicated region body
PF: predicated region fallthrough
CT: control target
= control target key end

     0   :  { %vm7_vm0 = vcmask 31744   ;;  %s39_s0 = inlined_call_operand.vmem [shape: f32[8], index: 0, kind: input, shape index: {}]   ;;  %s40_s1 = inlined_call_operand.vmem [shape: f32[2,4], index: 1, kind: output, shape index: {}]  }
   0x1   :  { %v4_v0 = vld [vmem:[%s39_s0] sm:$0x1]  ;;  %s22_s0 = smov 124  }
   0x2   :  { %5 = vst [vmem:[#allocation1] sm:$0x1] %v4_v0 }
   0x9   :  { %v9_v1 = vld [vmem:[#allocation1] sm:$0x1]  }
   0xa   :  { %v6_v2 = vld [vmem:[#allocation1] sm:$0x1]   ;;  %10 = vrot.lane.b32.xlu0 %v9_v1, %s22_s0 }
   0xb   :  { %8 = vst.msk [vmem:[#allocation0] sm:$0x1] %vm7_vm0, %v6_v2  }
  0x7c   :  { %v11_v3 = vpop.permute.xlu0 %10  }
  0x7d   :  { %14 = vst.msk [vmem:[#allocation0 + $0x1] sm:$0x1] %vm7_vm0, %v11_v3  }
  0x84   :  { %v18_v4 = vld [vmem:[#allocation0] sm:$0x3] }
  0x85   :  { %20 = vst [vmem:[%s40_s1] sm:$0x3] %v18_v4 }

// kernel: actor_critic_forward.3
= control target key start
LH: loop header
LB: loop body
LE: loop exit
PB: predicated region body
PF: predicated region fallthrough
CT: control target
= control target key end

     0   :  { %v344_v0 = vmov 0.0   ;;  %vm345_vm0 = vmmov 0   ;;  %vm54_vm1 = vcmask 261120   ;;  %vm100_vm2 = vcmask 257024   ;;  %s450_s2 = inlined_call_operand.vmem [shape: bf16[32,32], index: 2, kind: input, shape index: {}]   ;;  %s451_s1 = inlined_call_operand.vmem [shape: bf16[8,32], index: 1, kind: input, shape index: {}]   ;;  %s452_s4 = inlined_call_operand.vmem [shape: bf16[32,128], index: 4, kind: input, shape index: {}]   ;;  %s453_s3 = inlined_call_operand.vmem [shape: f32[1,32], index: 3, kind: input, shape index: {}]   ;;  %s454_s5 = inlined_call_operand.vmem [shape: f32[1,128], index: 5, kind: input, shape index: {}]   ;;  %s455_s6 = inlined_call_operand.vmem [shape: bf16[8,128], index: 6, kind: output, shape index: {0}]   ;;  %s456_s0 = inlined_call_operand.<no memory space> [shape: s32[1], index: 0, kind: input, shape index: {}]   ;;  %s457_s8 = inlined_call_operand.vmem [shape: f32[8,1], index: 8, kind: output, shape index: {2}]   ;;  %s458_s7 = inlined_call_operand.vmem [shape: s32[8,1], index: 7, kind: output, shape index: {1}]  }
   0x1   :  { %305 = vmatprep.subr.bf16.mxu0 %v344_v0  ;;  %v326_v1 = vld [vmem:[%s450_s2] sm:$0xff]   ;;  %309 = vmatprep.mubr.msk.bf16.mxu0 %vm345_vm0, %v344_v0  ;;  %v327_v2 = vld [vmem:[%s450_s2 + $0x8] sm:$0xff]   ;;  %vm102_vm3 = vcmask 7168   ;;  %v346_v15 = vmov -inf   ;;  %v347_v23 = vmov 0   ;;  %v201_v28 = vlaneseq }
   0x2   :  { %313 = vmatprep.subr.bf16.mxu1 %v344_v0  ;;  %317 = vmatprep.mubr.msk.bf16.mxu1 %vm345_vm0, %v344_v0  ;;  %v30_v3 = vld [vmem:[%s451_s1] sm:$0xf]  ;;  %v329_v5 = vld [vmem:[%s452_s4 + $0x8] sm:$0xff]   ;;  %103 = vst.msk [vmem:[#allocation3] sm:$0xff] %vm102_vm3, %v346_v15  ;;  %104 = vst.msk [vmem:[#allocation4] sm:$0xff] %vm102_vm3, %v344_v0  ;;  %v214_v33 = vstv %s456_s0 }
   0x3   :  { %306 = vmatpush3.bf16.msra.mxu0 %v326_v1  ;;  %v328_v4 = vld [vmem:[%s452_s4] sm:$0xff]   ;;  %105 = vst.msk [vmem:[#allocation5] sm:$0xff] %vm102_vm3, %v344_v0  ;;  %107 = vst.msk [vmem:[#allocation7] sm:$0xff] %vm102_vm3, %v346_v15  ;;  %325 = vset.pattern.permute.xlu0 %v347_v23  ;;  %v202_v29 = vshrl.u32 %v201_v28, 7  ;;  %v207_v30 = vand.u32 127, %v201_v28 }
   0x4   :  { %307 = vmatprep.subr.bf16.mxu0 %v344_v0  ;;  %314 = vmatpush3.bf16.msra.mxu1 %v328_v4  ;;  %v291_v6 = vld [vmem:[%s453_s3] ss:$0 sm:$0xff]  ;;  %106 = vst.msk [vmem:[#allocation6] sm:$0xff] %vm102_vm3, %v347_v23 }
   0x5   :  { %315 = vmatprep.subr.bf16.mxu1 %v344_v0  ;;  %v295_v16 = vld [vmem:[%s454_s5] ss:$0 sm:$0xff]  ;;  %v211_v31 = vmul.u32 128, %v202_v29 }
   0x7   :  { %308 = vmatpush3.bf16.msra.mxu0 %v327_v2  ;;  %v212_v32 = vadd.s32 %v211_v31, %v207_v30 }
   0x8   :  { %316 = vmatpush3.bf16.msra.mxu1 %v329_v5 }
   0x9   :  { %v178_v24 = vld [vmem:[#allocation3] sm:$0xff]  ;;  %v215_v34 = vadd.s32 %v214_v33, %v212_v32 }
   0xa   :  { %310 = vmatmul.mubr.msk.bf16.vlgmr.msra.gmra.mrb[0].mxu0 %vm54_vm1, %v30_v3  ;;  %v254_v58 = vld [vmem:[#allocation5] sm:$0xff] }
   0xb   :  { %v216_v35 = vshrl.u32 %v215_v34, 16 }
   0xd   :  { %v217_v36 = vxor.u32 %v216_v35, %v215_v34 }
   0xf   :  { %v218_v37 = vmul.u32 2146121005, %v217_v36 }
  0x11   :  { %v219_v38 = vshrl.u32 %v218_v37, 15 }
  0x13   :  { %v220_v39 = vxor.u32 %v219_v38, %v218_v37 }
  0x15   :  { %v221_v40 = vmul.u32 2221713035, %v220_v39 }
  0x17   :  { %v222_v41 = vshrl.u32 %v221_v40, 16 }
  0x19   :  { %v223_v42 = vxor.u32 %v222_v41, %v221_v40 }
  0x1b   :  { %v224_v43 = vshrl.u32 %v223_v42, 8 }
  0x1d   :  { %v225_v44 = vcvt.s32.f32 %v224_v43 }
  0x1f   :  { %v226_v45 = vadd.f32 0.5, %v225_v44 }
  0x21   :  { %v227_v46 = vmul.f32 5.9604645e-08, %v226_v45 }
  0xdd   :  { %v92_v7 = vpop.f32.mrb[0].mxu0 }
  0xde   :  { %v93_v8 = vadd.f32 %v291_v6, %v92_v7  ;;  %v311_v9 = vpop.f32.mrb[1].mxu0  ;;  %v262_v6 = vld [vmem:[#allocation7] sm:$0xff] }
  0xdf   :  { %v95_v10 = vpop.f32.mrb[2].mxu0 }
  0xe0   :  { %330 = vtanh.f32 %v93_v8  ;;  %v312_v11 = vpop.f32.mrb[3].mxu0  ;;  %v193_v8 = vld [vmem:[#allocation4] sm:$0xff] }
  0xe1   :  { %332 = vlog2.f32 %v227_v46 }
  0xea   :  { %v331_v12 = vpop.eup %330 }
  0xeb   :  { %v99_v13 = vpack.c.bf16 %v331_v12, %v331_v12  ;;  %v333_v47 = vpop.eup %332 }
  0xec   :  { %v229_v48 = vmul.f32 0.6931472, %v333_v47 }
  0xed   :  { %101 = vst.msk [vmem:[#allocation2] sm:$0xf] %vm100_vm2, %v99_v13 }
  0xee   :  { %v230_v49 = vsub.f32 0.0, %v229_v48 }
  0xf0   :  { %334 = vrcp.f32 %v230_v49 }
  0xf4   :  { %v108_v14 = vld [vmem:[#allocation2] sm:$0xf] }
  0xf5   :  { %318 = vmatmul.mubr.msk.bf16.vlgmr.msra.gmra.mrb[0].mxu1 %vm54_vm1, %v108_v14 }
  0xfa   :  { %v335_v53 = vpop.eup %334 }
 0x1c8   :  { %v170_v17 = vpop.f32.mrb[0].mxu1 }
 0x1c9   :  { %v420_v18 = vadd.f32 %v295_v16, %v170_v17  ;;  %v319_v19 = vpop.f32.mrb[1].mxu1 }
 0x1ca   :  { %v173_v20 = vpop.f32.mrb[2].mxu1 }
 0x1cb   :  { %v176_v21 = vpack.c.bf16 %v420_v18, %v420_v18  ;;  %179 = vmax.xlane.f32.xlu0 %v420_v18  ;;  %v320_v22 = vpop.f32.mrb[3].mxu1 }
 0x1cd   :  { %177 = vst [vmem:[%s455_s6] sm:$0xf] %v176_v21 }
 0x258   :  { %v180_v25 = vpop.xlane.xlu0 %179 }
 0x259   :  { %v181_v26 = vmax.f32 %v178_v24, %v180_v25  ;;  %v259_v25 = vld [vmem:[#allocation6] sm:$0xff] }
 0x25b   :  { %v182_v27 = vsub.f32 %v178_v24, %v181_v26  ;;  %200 = vst.msk [vmem:[#allocation3] sm:$0xff] %vm102_vm3, %v181_v26  ;;  %187 = vperm.xlu0 %325, %v181_v26  }
 0x25d   :  { %v183_v56 = vmul.f32 1.442695, %v182_v27 }
 0x262   :  { %v269_v13 = vld [vmem:[#allocation3] sm:$0xff] }
 0x2da   :  { %v188_v50 = vpop.permute.xlu0 %187 }
 0x2db   :  { %v190_v51 = vsub.f32 %v420_v18, %v188_v50 }
 0x2dd   :  { %v191_v52 = vmul.f32 1.442695, %v190_v51 }
 0x2df   :  { %336 = vpow2.f32 %v191_v52 }
 0x2e0   :  { %338 = vpow2.f32 %v183_v56 }
 0x2e9   :  { %v337_v54 = vpop.eup %336 }
 0x2ea   :  { %v232_v55 = vmul.f32 %v337_v54, %v335_v53  ;;  %v339_v57 = vpop.eup %338 }
 0x2eb   :  { %v255_v59 = vmul.f32 %v339_v57, %v254_v58  ;;  %v194_v10 = vmul.f32 %v339_v57, %v193_v8 }
 0x2ec   :  { %233 = vmax.xlane.f32.xlu1 %v232_v55 }
 0x379   :  { %v234_v60 = vpop.xlane.xlu1 %233 }
 0x37a   :  { %vm235_vm4 = vcmp.ge.f32.partialorder %v232_v55, %v234_v60  ;;  %vm256_vm5 = vcmp.gt.f32.partialorder %v234_v60, %v255_v59 }
 0x37b   :  { %v257_v61 = vsel %vm256_vm5, %v234_v60, %v255_v59  ;;  %v236_v62 = vsel %vm235_vm4, %v207_v30, 4294967295  ;;  %v251_v1 = vsel %vm235_vm4, %v420_v18, -inf }
 0x37c   :  { %258 = vst.msk [vmem:[#allocation5] sm:$0xff] %vm102_vm3, %v257_v61  ;;  %v238_v63 = vshra.s32 %v236_v62, 16  ;;  %v237_v2 = vand.u32 65535, %v236_v62 }
 0x37e   :  { %v240_v0 = vcvt.s32.f32 %v238_v63  ;;  %v239_v4 = vcvt.s32.f32 %v237_v2 }
 0x380   :  { %241 = vmax.xlane.f32.xlu1 %v240_v0 }
 0x384   :  { %252 = vmax.xlane.f32.xlu1 %v251_v1 }
 0x388   :  { %195 = vadd.xlane.f32.xlu1 %v337_v54 }
 0x40d   :  { %v242_v3 = vpop.xlane.xlu1 %241 }
 0x40e   :  { %vm243_vm6 = vcmp.eq.f32.partialorder %v240_v0, %v242_v3  ;;  %v248_v21 = vcvt.f32.s32 %v242_v3 }
 0x40f   :  { %v244_v5 = vsel %vm243_vm6, %v239_v4, -inf }
 0x410   :  { %245 = vmax.xlane.f32.xlu1 %v244_v5  ;;  %v249_v23 = vshll.u32 %v248_v21, 16 }
 0x411   :  { %v253_v7 = vpop.xlane.xlu1 %252 }
 0x412   :  { %v263_v9 = vsel %vm256_vm5, %v253_v7, %v262_v6 }
 0x413   :  { %264 = vst.msk [vmem:[#allocation7] sm:$0xff] %vm102_vm3, %v263_v9 }
 0x415   :  { %v196_v11 = vpop.xlane.xlu1 %195 }
 0x416   :  { %v197_v12 = vadd.f32 %v196_v11, %v194_v10 }
 0x418   :  { %199 = vst.msk [vmem:[#allocation4] sm:$0xff] %vm102_vm3, %v197_v12 }
 0x41a   :  { %v268_v14 = vld [vmem:[#allocation7] sm:$0xff] }
 0x41b   :  { %v270_v15 = vsub.f32 %v268_v14, %v269_v13 }
 0x41d   :  { %v271_v16 = vmul.f32 1.442695, %v270_v15 }
 0x41f   :  { %340 = vpow2.f32 %v271_v16  ;;  %v273_v17 = vld [vmem:[#allocation4] sm:$0xff] }
 0x420   :  { %342 = vrcp.f32 %v273_v17 }
 0x429   :  { %v341_v18 = vpop.eup %340 }
 0x42a   :  { %v343_v19 = vpop.eup %342 }
 0x42b   :  { %v275_v20 = vmul.f32 %v343_v19, %v341_v18 }
 0x42d   :  { %276 = vst.msk [vmem:[%s457_s8] sm:$0xff] %vm102_vm3, %v275_v20 }
 0x49d   :  { %v246_v22 = vpop.xlane.xlu1 %245 }
 0x49e   :  { %v247_v24 = vcvt.f32.s32 %v246_v22 }
 0x4a0   :  { %v250_v26 = vadd.s32 %v249_v23, %v247_v24 }
 0x4a2   :  { %v260_v27 = vsel %vm256_vm5, %v250_v26, %v259_v25 }
 0x4a3   :  { %261 = vst.msk [vmem:[#allocation6] sm:$0xff] %vm102_vm3, %v260_v27 }
 0x4aa   :  { %v277_v28 = vld [vmem:[#allocation6] sm:$0xff] }
 0x4ab   :  { %278 = vst.msk [vmem:[%s458_s7] sm:$0xff] %vm102_vm3, %v277_v28 }

// kernel: actor_critic_forward.5
= control target key start
LH: loop header
LB: loop body
LE: loop exit
PB: predicated region body
PF: predicated region fallthrough
CT: control target
= control target key end

     0   :  { %vm39_vm0 = vcmask 1043456   ;;  %v31_v0 = vlaneseq  ;;  %v359_v1 = vmov 0.0   ;;  %vm360_vm1 = vmmov 0   ;;  %s442_s0 = inlined_call_operand.vmem [shape: bf16[2,8,32], index: 0, kind: input, shape index: {}]   ;;  %s443_s1 = inlined_call_operand.vmem [shape: bf16[2,8], index: 1, kind: input, shape index: {}]   ;;  %s444_s2 = inlined_call_operand.vmem [shape: bf16[32,32], index: 2, kind: input, shape index: {}]   ;;  %s445_s4 = inlined_call_operand.vmem [shape: bf16[32,128], index: 4, kind: input, shape index: {}]   ;;  %s446_s3 = inlined_call_operand.vmem [shape: f32[1,32], index: 3, kind: input, shape index: {}]   ;;  %s447_s5 = inlined_call_operand.vmem [shape: f32[1,128], index: 5, kind: input, shape index: {}]   ;;  %s448_s6 = inlined_call_operand.vmem [shape: f32[2,128], index: 6, kind: output, shape index: {}]  }
   0x1   :  { %319 = vmatprep.subr.bf16.mxu0 %v359_v1  ;;  %325 = vmatprep.subr.bf16.mxu1 %v359_v1  ;;  %v25_v2 = vld [vmem:[%s442_s0] sm:$0xf]  ;;  %v26_v3 = vld [vmem:[%s442_s0 + $0x4] sm:$0xf]  ;;  %vm135_vm2 = vcmask 58368   ;;  %vm35_vm3 = vcmask 64512  }
   0x2   :  { %v24_v4 = vld [vmem:[%s443_s1] sm:$0x1]  ;;  %v41_v5 = vsel %vm39_vm0, %v25_v2, 0  ;;  %v92_v6 = vsel %vm39_vm0, %v26_v3, 0  ;;  %321 = vmatprep.mubr.msk.bf16.mxu0 %vm360_vm1, %v359_v1  ;;  %327 = vmatprep.mubr.msk.bf16.mxu1 %vm360_vm1, %v359_v1  ;;  %v32_v8 = vshrl.u32 %v31_v0, 7  ;;  %v350_v17 = vld [vmem:[%s444_s2 + $0x8] sm:$0xff]  }
   0x3   :  { %v298_v7 = vpack.i.b16 %v24_v4, %v24_v4  ;;  %320 = vmatpush3.bf16.msra.mxu0 %v41_v5  ;;  %326 = vmatpush3.bf16.msra.mxu1 %v92_v6  ;;  %v29_v9 = vunpack.i.h.s16 %v24_v4  ;;  %v134_v10 = vunpack.c.l.bf16 %v24_v4  ;;  %v349_v16 = vld [vmem:[%s444_s2] sm:$0xff]   ;;  %vm166_vm4 = vcmask 1041409   ;;  %v352_v41 = vld [vmem:[%s445_s4 + $0x8] sm:$0xff]  }
   0x4   :  { %v33_v11 = vsub.s32 0, %v32_v8  ;;  %331 = vmatprep.subr.bf16.mxu0 %v359_v1  ;;  %339 = vmatprep.subr.bf16.mxu1 %v359_v1  ;;  %vm181_vm5 = vcmask 261120   ;;  %v351_v40 = vld [vmem:[%s445_s4] sm:$0xff]  }
   0x5   :  { %v83_v12 = vpack.i.b16 %v29_v9, %v29_v9  ;;  %v136_v13 = vsel %vm135_vm2, %v134_v10, 0.0  ;;  %v301_v42 = vld [vmem:[%s446_s3] ss:$0 sm:$0xff] }
   0x6   :  { %v34_v14 = vrot.slane %v298_v7, %v33_v11  ;;  %137 = vadd.xlane.f32.xlu0 %v136_v13  ;;  %v305_v50 = vld [vmem:[%s447_s5] ss:$0 sm:$0xff] }
   0x7   :  { %v87_v15 = vrot.slane %v83_v12, %v33_v11 }
   0x8   :  { %322 = vmatmul.mubr.msk.bf16.vlgmr.msra.gmra.mrb[0].mxu0 %vm35_vm3, %v34_v14 }
   0x9   :  { %328 = vmatmul.mubr.msk.bf16.vlgmr.msra.gmra.mrb[0].mxu1 %vm35_vm3, %v87_v15  ;;  %335 = vmatprep.mubr.msk.bf16.mxu0 %vm360_vm1, %v359_v1 }
   0xa   :  { %343 = vmatprep.mubr.msk.bf16.mxu1 %vm360_vm1, %v359_v1  ;;  %332 = vmatpush3.bf16.msra.mxu0 %v349_v16 }
   0xb   :  { %333 = vmatprep.subr.bf16.mxu0 %v359_v1  ;;  %340 = vmatpush3.bf16.msra.mxu1 %v351_v40 }
   0xc   :  { %341 = vmatprep.subr.bf16.mxu1 %v359_v1 }
   0xe   :  { %334 = vmatpush3.bf16.msra.mxu0 %v350_v17 }
   0xf   :  { %342 = vmatpush3.bf16.msra.mxu1 %v352_v41 }
  0x93   :  { %v138_v18 = vpop.xlane.xlu0 %137 }
  0x94   :  { %v139_v19 = vmax.f32 %v138_v18, 1.0 }
  0x96   :  { %v141_v20 = vrot.slane %v139_v19, 1 }
  0x98   :  { %353 = vrcp.f32 %v141_v20 }
  0x99   :  { %355 = vrcp.f32 %v139_v19 }
  0xa2   :  { %v354_v21 = vpop.eup %353 }
  0xa3   :  { %v356_v22 = vpop.eup %355 }
  0xdb   :  { %v77_v23 = vpop.f32.mrb[0].mxu0 }
  0xdc   :  { %v145_v24 = vmul.f32 %v356_v22, %v77_v23  ;;  %v128_v25 = vpop.f32.mrb[0].mxu1  ;;  %v323_v26 = vpop.f32.mrb[1].mxu0 }
  0xdd   :  { %v147_v27 = vmul.f32 %v354_v21, %v128_v25  ;;  %v329_v28 = vpop.f32.mrb[1].mxu1  ;;  %v80_v29 = vpop.f32.mrb[2].mxu0 }
  0xde   :  { %v131_v30 = vpop.f32.mrb[2].mxu1  ;;  %v324_v31 = vpop.f32.mrb[3].mxu0  ;;  %v148_v32 = vpack.c.bf16 %v145_v24, %v145_v24 }
  0xdf   :  { %v149_v33 = vpack.c.bf16 %v147_v27, %v147_v27  ;;  %v330_v34 = vpop.f32.mrb[3].mxu1 }
  0xe0   :  { %v163_v36 = vunpack.c.l.b16 %v148_v32 }
  0xe1   :  { %v164_v35 = vunpack.c.l.b16 %v149_v33 }
  0xe3   :  { %v165_v37 = vrot.slane %v164_v35, 7 }
  0xe5   :  { %v167_v38 = vsel %vm166_vm4, %v165_v37, %v163_v36 }
  0xe6   :  { %v168_v39 = vpack.c.b16 %v167_v38, %v167_v38 }
  0xe8   :  { %336 = vmatmul.mubr.msk.bf16.vlgmr.msra.gmra.mrb[4].mxu0 %vm181_vm5, %v168_v39 }
 0x1bb   :  { %v219_v43 = vpop.f32.mrb[4].mxu0 }
 0x1bc   :  { %v220_v44 = vadd.f32 %v301_v42, %v219_v43  ;;  %v337_v45 = vpop.f32.mrb[5].mxu0 }
 0x1bd   :  { %v222_v46 = vpop.f32.mrb[6].mxu0 }
 0x1be   :  { %357 = vtanh.f32 %v220_v44  ;;  %v338_v47 = vpop.f32.mrb[7].mxu0 }
 0x1c8   :  { %v358_v48 = vpop.eup %357 }
 0x1c9   :  { %v226_v49 = vpack.c.bf16 %v358_v48, %v358_v48 }
 0x1cb   :  { %344 = vmatmul.mubr.msk.bf16.vlgmr.msra.gmra.mrb[4].mxu1 %vm181_vm5, %v226_v49 }
 0x29e   :  { %v287_v51 = vpop.f32.mrb[4].mxu1 }
 0x29f   :  { %v288_v52 = vadd.f32 %v305_v50, %v287_v51  ;;  %v345_v53 = vpop.f32.mrb[5].mxu1 }
 0x2a0   :  { %v290_v54 = vpop.f32.mrb[6].mxu1 }
 0x2a1   :  { %293 = vst [vmem:[%s448_s6] sm:$0x3] %v288_v52  ;;  %v346_v55 = vpop.f32.mrb[7].mxu1 }

// kernel: actor_critic_forward.4
= control target key start
LH: loop header
LB: loop body
LE: loop exit
PB: predicated region body
PF: predicated region fallthrough
CT: control target
= control target key end

     0   :  { %v337_v0 = vmov 0.0   ;;  %vm338_vm0 = vmmov 0   ;;  %vm53_vm1 = vcmask 261120   ;;  %vm99_vm2 = vcmask 257024   ;;  %s428_s2 = inlined_call_operand.vmem [shape: bf16[32,32], index: 2, kind: input, shape index: {}]   ;;  %s429_s1 = inlined_call_operand.vmem [shape: bf16[8,32], index: 1, kind: input, shape index: {}]   ;;  %s430_s4 = inlined_call_operand.vmem [shape: bf16[32,128], index: 4, kind: input, shape index: {}]   ;;  %s431_s3 = inlined_call_operand.vmem [shape: f32[1,32], index: 3, kind: input, shape index: {}]   ;;  %s432_s5 = inlined_call_operand.vmem [shape: f32[1,128], index: 5, kind: input, shape index: {}]   ;;  %s433_s0 = inlined_call_operand.<no memory space> [shape: s32[1], index: 0, kind: input, shape index: {}]   ;;  %s434_s7 = inlined_call_operand.vmem [shape: f32[8,1], index: 7, kind: output, shape index: {1}]   ;;  %s435_s6 = inlined_call_operand.vmem [shape: s32[8,1], index: 6, kind: output, shape index: {0}]  }
   0x1   :  { %298 = vmatprep.subr.bf16.mxu0 %v337_v0  ;;  %v319_v1 = vld [vmem:[%s428_s2] sm:$0xff]   ;;  %302 = vmatprep.mubr.msk.bf16.mxu0 %vm338_vm0, %v337_v0  ;;  %v320_v2 = vld [vmem:[%s428_s2 + $0x8] sm:$0xff]   ;;  %vm101_vm3 = vcmask 7168   ;;  %v339_v15 = vmov -inf   ;;  %v340_v22 = vmov 0   ;;  %v198_v27 = vlaneseq }
   0x2   :  { %306 = vmatprep.subr.bf16.mxu1 %v337_v0  ;;  %310 = vmatprep.mubr.msk.bf16.mxu1 %vm338_vm0, %v337_v0  ;;  %v29_v3 = vld [vmem:[%s429_s1] sm:$0xf]  ;;  %v322_v5 = vld [vmem:[%s430_s4 + $0x8] sm:$0xff]   ;;  %102 = vst.msk [vmem:[#allocation3] sm:$0xff] %vm101_vm3, %v339_v15  ;;  %103 = vst.msk [vmem:[#allocation4] sm:$0xff] %vm101_vm3, %v337_v0  ;;  %v211_v32 = vstv %s433_s0 }
   0x3   :  { %299 = vmatpush3.bf16.msra.mxu0 %v319_v1  ;;  %v321_v4 = vld [vmem:[%s430_s4] sm:$0xff]   ;;  %104 = vst.msk [vmem:[#allocation5] sm:$0xff] %vm101_vm3, %v337_v0  ;;  %106 = vst.msk [vmem:[#allocation7] sm:$0xff] %vm101_vm3, %v339_v15  ;;  %318 = vset.pattern.permute.xlu0 %v340_v22  ;;  %v199_v28 = vshrl.u32 %v198_v27, 7  ;;  %v204_v29 = vand.u32 127, %v198_v27 }
   0x4   :  { %300 = vmatprep.subr.bf16.mxu0 %v337_v0  ;;  %307 = vmatpush3.bf16.msra.mxu1 %v321_v4  ;;  %v284_v6 = vld [vmem:[%s431_s3] ss:$0 sm:$0xff]  ;;  %105 = vst.msk [vmem:[#allocation6] sm:$0xff] %vm101_vm3, %v340_v22 }
   0x5   :  { %308 = vmatprep.subr.bf16.mxu1 %v337_v0  ;;  %v288_v16 = vld [vmem:[%s432_s5] ss:$0 sm:$0xff]  ;;  %v208_v30 = vmul.u32 128, %v199_v28 }
   0x7   :  { %301 = vmatpush3.bf16.msra.mxu0 %v320_v2  ;;  %v209_v31 = vadd.s32 %v208_v30, %v204_v29 }
   0x8   :  { %309 = vmatpush3.bf16.msra.mxu1 %v322_v5 }
   0x9   :  { %v175_v23 = vld [vmem:[#allocation3] sm:$0xff]  ;;  %v212_v33 = vadd.s32 %v211_v32, %v209_v31 }
   0xa   :  { %303 = vmatmul.mubr.msk.bf16.vlgmr.msra.gmra.mrb[0].mxu0 %vm53_vm1, %v29_v3  ;;  %v251_v57 = vld [vmem:[#allocation5] sm:$0xff]  ;;  %v259_v5 = vld [vmem:[#allocation7] sm:$0xff] }
   0xb   :  { %v213_v34 = vshrl.u32 %v212_v33, 16 }
   0xd   :  { %v214_v35 = vxor.u32 %v213_v34, %v212_v33 }
   0xf   :  { %v215_v36 = vmul.u32 2146121005, %v214_v35 }
  0x11   :  { %v216_v37 = vshrl.u32 %v215_v36, 15 }
  0x13   :  { %v217_v38 = vxor.u32 %v216_v37, %v215_v36 }
  0x15   :  { %v218_v39 = vmul.u32 2221713035, %v217_v38 }
  0x17   :  { %v219_v40 = vshrl.u32 %v218_v39, 16 }
  0x19   :  { %v220_v41 = vxor.u32 %v219_v40, %v218_v39 }
  0x1b   :  { %v221_v42 = vshrl.u32 %v220_v41, 8 }
  0x1d   :  { %v222_v43 = vcvt.s32.f32 %v221_v42 }
  0x1f   :  { %v223_v44 = vadd.f32 0.5, %v222_v43 }
  0x21   :  { %v224_v45 = vmul.f32 5.9604645e-08, %v223_v44 }
  0xdd   :  { %v91_v7 = vpop.f32.mrb[0].mxu0 }
  0xde   :  { %v92_v8 = vadd.f32 %v284_v6, %v91_v7  ;;  %v304_v9 = vpop.f32.mrb[1].mxu0  ;;  %v190_v7 = vld [vmem:[#allocation4] sm:$0xff] }
  0xdf   :  { %v94_v10 = vpop.f32.mrb[2].mxu0 }
  0xe0   :  { %323 = vtanh.f32 %v92_v8  ;;  %v305_v11 = vpop.f32.mrb[3].mxu0 }
  0xe1   :  { %325 = vlog2.f32 %v224_v45 }
  0xea   :  { %v324_v12 = vpop.eup %323 }
  0xeb   :  { %v98_v13 = vpack.c.bf16 %v324_v12, %v324_v12  ;;  %v326_v46 = vpop.eup %325 }
  0xec   :  { %v226_v47 = vmul.f32 0.6931472, %v326_v46 }
  0xed   :  { %100 = vst.msk [vmem:[#allocation2] sm:$0xf] %vm99_vm2, %v98_v13 }
  0xee   :  { %v227_v48 = vsub.f32 0.0, %v226_v47 }
  0xf0   :  { %327 = vrcp.f32 %v227_v48 }
  0xf4   :  { %v107_v14 = vld [vmem:[#allocation2] sm:$0xf] }
  0xf5   :  { %311 = vmatmul.mubr.msk.bf16.vlgmr.msra.gmra.mrb[0].mxu1 %vm53_vm1, %v107_v14 }
  0xfa   :  { %v328_v52 = vpop.eup %327 }
 0x1c8   :  { %v169_v17 = vpop.f32.mrb[0].mxu1 }
 0x1c9   :  { %v170_v18 = vadd.f32 %v288_v16, %v169_v17  ;;  %v312_v19 = vpop.f32.mrb[1].mxu1 }
 0x1ca   :  { %v172_v20 = vpop.f32.mrb[2].mxu1 }
 0x1cb   :  { %176 = vmax.xlane.f32.xlu0 %v170_v18  ;;  %v313_v21 = vpop.f32.mrb[3].mxu1 }
 0x258   :  { %v177_v24 = vpop.xlane.xlu0 %176 }
 0x259   :  { %v178_v25 = vmax.f32 %v175_v23, %v177_v24  ;;  %v256_v24 = vld [vmem:[#allocation6] sm:$0xff] }
 0x25b   :  { %v179_v26 = vsub.f32 %v175_v23, %v178_v25  ;;  %197 = vst.msk [vmem:[#allocation3] sm:$0xff] %vm101_vm3, %v178_v25  ;;  %184 = vperm.xlu0 %318, %v178_v25  }
 0x25d   :  { %v180_v55 = vmul.f32 1.442695, %v179_v26 }
 0x262   :  { %v266_v12 = vld [vmem:[#allocation3] sm:$0xff] }
 0x2da   :  { %v185_v49 = vpop.permute.xlu0 %184 }
 0x2db   :  { %v187_v50 = vsub.f32 %v170_v18, %v185_v49 }
 0x2dd   :  { %v188_v51 = vmul.f32 1.442695, %v187_v50 }
 0x2df   :  { %329 = vpow2.f32 %v188_v51 }
 0x2e0   :  { %331 = vpow2.f32 %v180_v55 }
 0x2e9   :  { %v330_v53 = vpop.eup %329 }
 0x2ea   :  { %v229_v54 = vmul.f32 %v330_v53, %v328_v52  ;;  %v332_v56 = vpop.eup %331 }
 0x2eb   :  { %v252_v58 = vmul.f32 %v332_v56, %v251_v57  ;;  %v191_v9 = vmul.f32 %v332_v56, %v190_v7 }
 0x2ec   :  { %230 = vmax.xlane.f32.xlu1 %v229_v54 }
 0x379   :  { %v231_v59 = vpop.xlane.xlu1 %230 }
 0x37a   :  { %vm232_vm4 = vcmp.ge.f32.partialorder %v229_v54, %v231_v59  ;;  %vm253_vm5 = vcmp.gt.f32.partialorder %v231_v59, %v252_v58 }
 0x37b   :  { %v254_v60 = vsel %vm253_vm5, %v231_v59, %v252_v58  ;;  %v233_v61 = vsel %vm232_vm4, %v204_v29, 4294967295  ;;  %v248_v0 = vsel %vm232_vm4, %v170_v18, -inf }
 0x37c   :  { %255 = vst.msk [vmem:[#allocation5] sm:$0xff] %vm101_vm3, %v254_v60  ;;  %v235_v62 = vshra.s32 %v233_v61, 16  ;;  %v234_v1 = vand.u32 65535, %v233_v61 }
 0x37e   :  { %v237_v63 = vcvt.s32.f32 %v235_v62  ;;  %v236_v3 = vcvt.s32.f32 %v234_v1 }
 0x380   :  { %238 = vmax.xlane.f32.xlu1 %v237_v63 }
 0x384   :  { %249 = vmax.xlane.f32.xlu1 %v248_v0 }
 0x388   :  { %192 = vadd.xlane.f32.xlu1 %v330_v53 }
 0x40d   :  { %v239_v2 = vpop.xlane.xlu1 %238 }
 0x40e   :  { %vm240_vm6 = vcmp.eq.f32.partialorder %v237_v63, %v239_v2  ;;  %v245_v20 = vcvt.f32.s32 %v239_v2 }
 0x40f   :  { %v241_v4 = vsel %vm240_vm6, %v236_v3, -inf }
 0x410   :  { %242 = vmax.xlane.f32.xlu1 %v241_v4  ;;  %v246_v22 = vshll.u32 %v245_v20, 16 }
 0x411   :  { %v250_v6 = vpop.xlane.xlu1 %249 }
 0x412   :  { %v260_v8 = vsel %vm253_vm5, %v250_v6, %v259_v5 }
 0x413   :  { %261 = vst.msk [vmem:[#allocation7] sm:$0xff] %vm101_vm3, %v260_v8 }
 0x415   :  { %v193_v10 = vpop.xlane.xlu1 %192 }
 0x416   :  { %v194_v11 = vadd.f32 %v193_v10, %v191_v9 }
 0x418   :  { %196 = vst.msk [vmem:[#allocation4] sm:$0xff] %vm101_vm3, %v194_v11 }
 0x41a   :  { %v265_v13 = vld [vmem:[#allocation7] sm:$0xff] }
 0x41b   :  { %v267_v14 = vsub.f32 %v265_v13, %v266_v12 }
 0x41d   :  { %v268_v15 = vmul.f32 1.442695, %v267_v14 }
 0x41f   :  { %333 = vpow2.f32 %v268_v15  ;;  %v270_v16 = vld [vmem:[#allocation4] sm:$0xff] }
 0x420   :  { %335 = vrcp.f32 %v270_v16 }
 0x429   :  { %v334_v17 = vpop.eup %333 }
 0x42a   :  { %v336_v18 = vpop.eup %335 }
 0x42b   :  { %v272_v19 = vmul.f32 %v336_v18, %v334_v17 }
 0x42d   :  { %273 = vst.msk [vmem:[%s434_s7] sm:$0xff] %vm101_vm3, %v272_v19 }
 0x49d   :  { %v243_v21 = vpop.xlane.xlu1 %242 }
 0x49e   :  { %v244_v23 = vcvt.f32.s32 %v243_v21 }
 0x4a0   :  { %v247_v25 = vadd.s32 %v246_v22, %v244_v23 }
 0x4a2   :  { %v257_v26 = vsel %vm253_vm5, %v247_v25, %v256_v24 }
 0x4a3   :  { %258 = vst.msk [vmem:[#allocation6] sm:$0xff] %vm101_vm3, %v257_v26 }
 0x4aa   :  { %v274_v27 = vld [vmem:[#allocation6] sm:$0xff] }
 0x4ab   :  { %275 = vst.msk [vmem:[%s435_s6] sm:$0xff] %vm101_vm3, %v274_v27 }

</bundles_post_ra>
